<compile_context>
chip_gen: v5e
topology: v5e:2x2
jax: 0.10.0
libtpu: 0.0.40
codegen_flags: <defaults>
</compile_context>

<pallas_src>
import functools

import jax
import jax.numpy as jnp
from jax import lax
from jax.experimental import pallas as pl
from jax.experimental.pallas import tpu as pltpu

EPS = 1e-5  # PyTorch BatchNorm2d default eps


def _tap_offsets(W):
    """Flat offsets of the 9 conv taps in the padded (H+2, W+2) row-major image,
    relative to the output column index c = h*(W+2) + w."""
    return tuple(kh * (W + 2) + kw for kh in range(3) for kw in range(3))


def _conv_cols(xf_ref, w_ref, Cin, C, offs):
    """conv output over C "shifted" columns: y (Cout, C) = sum_t W_t @ tap_t.

    xf_ref: (Cin, P) flattened padded image; tap_t = xf_ref[:, off_t : off_t + C].
    w_ref:  (Cout, 9*Cin), rows ordered (kh, kw, cin)  -> slice per tap.
    Nine K=Cin accumulating dots keep everything as plain lane slices + MXU matmuls
    (no in-kernel concat/reshape), which lowers robustly; compute is negligible here.
    """
    y = None
    for t, off in enumerate(offs):
        tap = xf_ref[:, off:off + C]                       # (Cin, C) lane slice
        wk = w_ref[:, t * Cin:(t + 1) * Cin]               # (Cout, Cin)
        part = jnp.dot(wk, tap, preferred_element_type=jnp.float32)
        y = part if y is None else y + part
    return y                                               # (Cout, C) f32


def stats_kernel(xf_ref, w_ref, mask_ref, sum_ref, sq_ref, *, Cin, C, offs):
    """Pass 1: per-image per-channel sum / sum-of-squares of the conv output.

    mask_ref (1, C) is 1.0 on valid output columns (c % (W+2) < W) and 0.0 on the
    horizontal-halo junk columns, so they never enter the BN statistics.
    """
    y = _conv_cols(xf_ref, w_ref, Cin, C, offs)            # (Cout, C)
    m = mask_ref[...]                                      # (1, C)
    ym = y * m
    sum_ref[...] = jnp.sum(ym, axis=1, keepdims=True)      # (Cout, 1)
    sq_ref[...] = jnp.sum(ym * y, axis=1, keepdims=True)   # (Cout, 1)


def out_kernel(xf_ref, w_ref, bias_ref, o_ref, *, Cin, C, offs, H, W):
    """Pass 2: recompute conv with BN folded into the weights, add bias, ReLU, and
    repack the valid columns lane-dense into the (Cout, H*W) output block."""
    y = _conv_cols(xf_ref, w_ref, Cin, C, offs) + bias_ref[...]   # (Cout, C)
    y = jnp.maximum(y, 0.0)
    # Valid conv columns live at c = h*(W+2) + w; drop the 2 halo columns per row.
    for h in range(H):
        o_ref[:, h * W:(h + 1) * W] = y[:, h * (W + 2):h * (W + 2) + W].astype(o_ref.dtype)


@jax.jit
def layer1_forward(x_nchw, weight_oihw):
    """x_nchw: (N, Cin, H, W); weight: (Cout, Cin, 3, 3) -> (N, Cout, H, W)."""
    N, Cin, H, W = x_nchw.shape
    Cout = weight_oihw.shape[0]
    Wp = W + 2
    P = (H + 2) * Wp          # flattened padded image length
    C = H * Wp - 2            # shifted-column range covering all valid outputs
    M = N * H * W             # real element count per channel (for BN stats)
    K9 = 9 * Cin
    offs = _tap_offsets(W)    # max off + C == P exactly, so all slices are in-bounds

    # --- wrapper glue (all tiny): pad once, flatten (free), weight relayout, mask ---
    xf = x_nchw.astype(jnp.float32)
    xp = jnp.pad(xf, ((0, 0), (0, 0), (1, 1), (1, 1))).reshape(N, Cin, P)

    # (Cout, Cin, 3, 3) -> (Cout, 3, 3, Cin) -> (Cout, 9*Cin): rows ordered (kh, kw, cin)
    wT = jnp.transpose(weight_oihw.astype(jnp.float32), (0, 2, 3, 1)).reshape(Cout, K9)

    col = jnp.arange(C, dtype=jnp.int32)
    mask = ((col % Wp) < W).astype(jnp.float32)[None, :]   # (1, C): exactly H*W ones

    # ---------------- pass 1: BN statistics only (no conv output written) ----------
    sums, sqs = pl.pallas_call(
        functools.partial(stats_kernel, Cin=Cin, C=C, offs=offs),
        out_shape=(
            jax.ShapeDtypeStruct((N, Cout, 1), jnp.float32),
            jax.ShapeDtypeStruct((N, Cout, 1), jnp.float32),
        ),
        grid_spec=pltpu.PrefetchScalarGridSpec(
            num_scalar_prefetch=0,
            grid=(N,),
            in_specs=[
                pl.BlockSpec((None, Cin, P), lambda n: (n, 0, 0)),   # one padded image
                pl.BlockSpec((Cout, K9), lambda n: (0, 0)),          # weights, resident
                pl.BlockSpec((1, C), lambda n: (0, 0)),              # valid-column mask
            ],
            out_specs=[
                pl.BlockSpec((None, Cout, 1), lambda n: (n, 0, 0)),
                pl.BlockSpec((None, Cout, 1), lambda n: (n, 0, 0)),
            ],
        ),
        compiler_params=pltpu.CompilerParams(dimension_semantics=("parallel",)),
    )(xp, wT, mask)

    # Global biased batch statistics (tiny reduction in the wrapper).
    # NOTE: E[y^2] - E[y]^2 in f32; clamp at 0 to guard rounding.  Fine for these
    # scales; a shifted two-pass variance would be safer for extreme channel means.
    total = jnp.sum(sums, axis=0)                 # (Cout, 1)
    total_sq = jnp.sum(sqs, axis=0)               # (Cout, 1)
    mean = total / M
    var = jnp.maximum(total_sq / M - mean * mean, 0.0)
    inv_std = lax.rsqrt(var + EPS)

    # Fold BN into the GEMM: y_norm = (W*inv_std) @ P + (-mean*inv_std).
    w_scaled = wT * inv_std                       # (Cout, 9*Cin)
    bias = -mean * inv_std                        # (Cout, 1)

    # ---------------- pass 2: recompute conv + bias + ReLU, final layout -----------
    out = pl.pallas_call(
        functools.partial(out_kernel, Cin=Cin, C=C, offs=offs, H=H, W=W),
        out_shape=jax.ShapeDtypeStruct((N, Cout, H * W), x_nchw.dtype),
        grid_spec=pltpu.PrefetchScalarGridSpec(
            num_scalar_prefetch=0,
            grid=(N,),
            in_specs=[
                pl.BlockSpec((None, Cin, P), lambda n: (n, 0, 0)),
                pl.BlockSpec((Cout, K9), lambda n: (0, 0)),
                pl.BlockSpec((Cout, 1), lambda n: (0, 0)),
            ],
            out_specs=pl.BlockSpec((None, Cout, H * W), lambda n: (n, 0, 0)),
        ),
        compiler_params=pltpu.CompilerParams(dimension_semantics=("parallel",)),
    )(xp, w_scaled, bias)

    # (N, Cout, H*W) -> (N, Cout, H, W): pure metadata reshape, no transpose copy.
    return out.reshape(N, Cout, H, W)


if __name__ == "__main__":
    key = jax.random.PRNGKey(0)
    kx, kw = jax.random.split(key)

    N, Cin, H, W = 2, 4, 16, 16
    Cout = 32

    x = jax.random.normal(kx, (N, Cin, H, W), dtype=jnp.float32)
    # Deterministic Conv2d weight (kaiming-like scale), bias=False.
    fan_in = Cin * 3 * 3
    weight = jax.random.normal(kw, (Cout, Cin, 3, 3), dtype=jnp.float32) * (
        (2.0 / fan_in) ** 0.5
    )

    out = layer1_forward(x, weight)
    out = jax.block_until_ready(out)

    assert out.shape == (N, Cout, H, W), out.shape
    assert out.dtype == jnp.float32
    assert bool(jnp.min(out) >= 0.0)            # ReLU
    assert bool(jnp.isfinite(out).all())

    # Pure-JAX reference: conv -> batch-norm (biased, eps=1e-5) -> ReLU.
    ref_conv = jax.lax.conv_general_dilated(
        x, weight, window_strides=(1, 1), padding=((1, 1), (1, 1)),
        dimension_numbers=("NCHW", "OIHW", "NCHW"),
        precision=jax.lax.Precision.HIGHEST,
    )
    r_mean = jnp.mean(ref_conv, axis=(0, 2, 3), keepdims=True)
    r_var = jnp.var(ref_conv, axis=(0, 2, 3), keepdims=True)
    ref = jnp.maximum((ref_conv - r_mean) * jax.lax.rsqrt(r_var + EPS), 0.0)
    max_err = float(jnp.max(jnp.abs(out - ref)))
    assert max_err < 2e-3, max_err

    print("KERNEL_OK")
</pallas_src>

<mosaic_0001>
module attributes {stable_mosaic.version = 11 : i64} {
  func.func @stats_kernel(%arg0: i32, %arg1: memref<1x4x324xf32, #tpu.memory_space<vmem>>, %arg2: memref<32x36xf32, #tpu.memory_space<vmem>>, %arg3: memref<1x286xf32, #tpu.memory_space<vmem>>, %arg4: memref<1x32x1xf32, #tpu.memory_space<vmem>>, %arg5: memref<1x32x1xf32, #tpu.memory_space<vmem>>) attributes {dimension_semantics = [#tpu.dimension_semantics<parallel>], iteration_bounds = array<i64: 2>, scalar_prefetch = 0 : i64, scratch_operands = 0 : i64, tpu.core_type = #tpu.core_type<tc>, window_params = [{transform_indices = @transform_0, window_bounds = array<i64: 1, 4, 324>}, {pipeline_mode = #tpu.pipeline_mode<synchronous>, transform_indices = @transform_1, window_bounds = array<i64: 32, 36>}, {pipeline_mode = #tpu.pipeline_mode<synchronous>, transform_indices = @transform_2, window_bounds = array<i64: 1, 286>}, {transform_indices = @transform_3, window_bounds = array<i64: 1, 32, 1>}, {transform_indices = @transform_4, window_bounds = array<i64: 1, 32, 1>}]} {
    %c0 = arith.constant 0 : index
    %c0_0 = arith.constant 0 : index
    %c0_1 = arith.constant 0 : index
    %0 = vector.load %arg1[%c0, %c0_0, %c0_1] : memref<1x4x324xf32, #tpu.memory_space<vmem>>, vector<1x4x286xf32>
    %1 = vector.shape_cast %0 : vector<1x4x286xf32> to vector<4x286xf32>
    %c0_2 = arith.constant 0 : index
    %c0_3 = arith.constant 0 : index
    %2 = vector.load %arg2[%c0_2, %c0_3] : memref<32x36xf32, #tpu.memory_space<vmem>>, vector<32x4xf32>
    %cst = arith.constant dense<0.000000e+00> : vector<32x286xf32>
    %3 = tpu.matmul %2, %1, %cst {dimension_numbers = #tpu.dot_dimension_numbers<[1], [0], [0], [1], [0, 0, 1, 1], [], []>} : vector<32x4xf32>, vector<4x286xf32>, vector<32x286xf32> -> vector<32x286xf32>
    %c0_4 = arith.constant 0 : index
    %c0_5 = arith.constant 0 : index
    %c1 = arith.constant 1 : index
    %4 = vector.load %arg1[%c0_4, %c0_5, %c1] : memref<1x4x324xf32, #tpu.memory_space<vmem>>, vector<1x4x286xf32>
    %5 = vector.shape_cast %4 : vector<1x4x286xf32> to vector<4x286xf32>
    %c0_6 = arith.constant 0 : index
    %c4 = arith.constant 4 : index
    %6 = vector.load %arg2[%c0_6, %c4] : memref<32x36xf32, #tpu.memory_space<vmem>>, vector<32x4xf32>
    %cst_7 = arith.constant dense<0.000000e+00> : vector<32x286xf32>
    %7 = tpu.matmul %6, %5, %cst_7 {dimension_numbers = #tpu.dot_dimension_numbers<[1], [0], [0], [1], [0, 0, 1, 1], [], []>} : vector<32x4xf32>, vector<4x286xf32>, vector<32x286xf32> -> vector<32x286xf32>
    %8 = arith.addf %3, %7 : vector<32x286xf32>
    %c0_8 = arith.constant 0 : index
    %c0_9 = arith.constant 0 : index
    %c2 = arith.constant 2 : index
    %9 = vector.load %arg1[%c0_8, %c0_9, %c2] : memref<1x4x324xf32, #tpu.memory_space<vmem>>, vector<1x4x286xf32>
    %10 = vector.shape_cast %9 : vector<1x4x286xf32> to vector<4x286xf32>
    %c0_10 = arith.constant 0 : index
    %c8 = arith.constant 8 : index
    %11 = vector.load %arg2[%c0_10, %c8] : memref<32x36xf32, #tpu.memory_space<vmem>>, vector<32x4xf32>
    %cst_11 = arith.constant dense<0.000000e+00> : vector<32x286xf32>
    %12 = tpu.matmul %11, %10, %cst_11 {dimension_numbers = #tpu.dot_dimension_numbers<[1], [0], [0], [1], [0, 0, 1, 1], [], []>} : vector<32x4xf32>, vector<4x286xf32>, vector<32x286xf32> -> vector<32x286xf32>
    %13 = arith.addf %8, %12 : vector<32x286xf32>
    %c0_12 = arith.constant 0 : index
    %c0_13 = arith.constant 0 : index
    %c18 = arith.constant 18 : index
    %14 = vector.load %arg1[%c0_12, %c0_13, %c18] : memref<1x4x324xf32, #tpu.memory_space<vmem>>, vector<1x4x286xf32>
    %15 = vector.shape_cast %14 : vector<1x4x286xf32> to vector<4x286xf32>
    %c0_14 = arith.constant 0 : index
    %c12 = arith.constant 12 : index
    %16 = vector.load %arg2[%c0_14, %c12] : memref<32x36xf32, #tpu.memory_space<vmem>>, vector<32x4xf32>
    %cst_15 = arith.constant dense<0.000000e+00> : vector<32x286xf32>
    %17 = tpu.matmul %16, %15, %cst_15 {dimension_numbers = #tpu.dot_dimension_numbers<[1], [0], [0], [1], [0, 0, 1, 1], [], []>} : vector<32x4xf32>, vector<4x286xf32>, vector<32x286xf32> -> vector<32x286xf32>
    %18 = arith.addf %13, %17 : vector<32x286xf32>
    %c0_16 = arith.constant 0 : index
    %c0_17 = arith.constant 0 : index
    %c19 = arith.constant 19 : index
    %19 = vector.load %arg1[%c0_16, %c0_17, %c19] : memref<1x4x324xf32, #tpu.memory_space<vmem>>, vector<1x4x286xf32>
    %20 = vector.shape_cast %19 : vector<1x4x286xf32> to vector<4x286xf32>
    %c0_18 = arith.constant 0 : index
    %c16 = arith.constant 16 : index
    %21 = vector.load %arg2[%c0_18, %c16] : memref<32x36xf32, #tpu.memory_space<vmem>>, vector<32x4xf32>
    %cst_19 = arith.constant dense<0.000000e+00> : vector<32x286xf32>
    %22 = tpu.matmul %21, %20, %cst_19 {dimension_numbers = #tpu.dot_dimension_numbers<[1], [0], [0], [1], [0, 0, 1, 1], [], []>} : vector<32x4xf32>, vector<4x286xf32>, vector<32x286xf32> -> vector<32x286xf32>
    %23 = arith.addf %18, %22 : vector<32x286xf32>
    %c0_20 = arith.constant 0 : index
    %c0_21 = arith.constant 0 : index
    %c20 = arith.constant 20 : index
    %24 = vector.load %arg1[%c0_20, %c0_21, %c20] : memref<1x4x324xf32, #tpu.memory_space<vmem>>, vector<1x4x286xf32>
    %25 = vector.shape_cast %24 : vector<1x4x286xf32> to vector<4x286xf32>
    %c0_22 = arith.constant 0 : index
    %c20_23 = arith.constant 20 : index
    %26 = vector.load %arg2[%c0_22, %c20_23] : memref<32x36xf32, #tpu.memory_space<vmem>>, vector<32x4xf32>
    %cst_24 = arith.constant dense<0.000000e+00> : vector<32x286xf32>
    %27 = tpu.matmul %26, %25, %cst_24 {dimension_numbers = #tpu.dot_dimension_numbers<[1], [0], [0], [1], [0, 0, 1, 1], [], []>} : vector<32x4xf32>, vector<4x286xf32>, vector<32x286xf32> -> vector<32x286xf32>
    %28 = arith.addf %23, %27 : vector<32x286xf32>
    %c0_25 = arith.constant 0 : index
    %c0_26 = arith.constant 0 : index
    %c36 = arith.constant 36 : index
    %29 = vector.load %arg1[%c0_25, %c0_26, %c36] : memref<1x4x324xf32, #tpu.memory_space<vmem>>, vector<1x4x286xf32>
    %30 = vector.shape_cast %29 : vector<1x4x286xf32> to vector<4x286xf32>
    %c0_27 = arith.constant 0 : index
    %c24 = arith.constant 24 : index
    %31 = vector.load %arg2[%c0_27, %c24] : memref<32x36xf32, #tpu.memory_space<vmem>>, vector<32x4xf32>
    %cst_28 = arith.constant dense<0.000000e+00> : vector<32x286xf32>
    %32 = tpu.matmul %31, %30, %cst_28 {dimension_numbers = #tpu.dot_dimension_numbers<[1], [0], [0], [1], [0, 0, 1, 1], [], []>} : vector<32x4xf32>, vector<4x286xf32>, vector<32x286xf32> -> vector<32x286xf32>
    %33 = arith.addf %28, %32 : vector<32x286xf32>
    %c0_29 = arith.constant 0 : index
    %c0_30 = arith.constant 0 : index
    %c37 = arith.constant 37 : index
    %34 = vector.load %arg1[%c0_29, %c0_30, %c37] : memref<1x4x324xf32, #tpu.memory_space<vmem>>, vector<1x4x286xf32>
    %35 = vector.shape_cast %34 : vector<1x4x286xf32> to vector<4x286xf32>
    %c0_31 = arith.constant 0 : index
    %c28 = arith.constant 28 : index
    %36 = vector.load %arg2[%c0_31, %c28] : memref<32x36xf32, #tpu.memory_space<vmem>>, vector<32x4xf32>
    %cst_32 = arith.constant dense<0.000000e+00> : vector<32x286xf32>
    %37 = tpu.matmul %36, %35, %cst_32 {dimension_numbers = #tpu.dot_dimension_numbers<[1], [0], [0], [1], [0, 0, 1, 1], [], []>} : vector<32x4xf32>, vector<4x286xf32>, vector<32x286xf32> -> vector<32x286xf32>
    %38 = arith.addf %33, %37 : vector<32x286xf32>
    %c0_33 = arith.constant 0 : index
    %c0_34 = arith.constant 0 : index
    %c38 = arith.constant 38 : index
    %39 = vector.load %arg1[%c0_33, %c0_34, %c38] : memref<1x4x324xf32, #tpu.memory_space<vmem>>, vector<1x4x286xf32>
    %40 = vector.shape_cast %39 : vector<1x4x286xf32> to vector<4x286xf32>
    %c0_35 = arith.constant 0 : index
    %c32 = arith.constant 32 : index
    %41 = vector.load %arg2[%c0_35, %c32] : memref<32x36xf32, #tpu.memory_space<vmem>>, vector<32x4xf32>
    %cst_36 = arith.constant dense<0.000000e+00> : vector<32x286xf32>
    %42 = tpu.matmul %41, %40, %cst_36 {dimension_numbers = #tpu.dot_dimension_numbers<[1], [0], [0], [1], [0, 0, 1, 1], [], []>} : vector<32x4xf32>, vector<4x286xf32>, vector<32x286xf32> -> vector<32x286xf32>
    %43 = arith.addf %38, %42 : vector<32x286xf32>
    %c0_37 = arith.constant 0 : index
    %c0_38 = arith.constant 0 : index
    %44 = vector.load %arg3[%c0_37, %c0_38] : memref<1x286xf32, #tpu.memory_space<vmem>>, vector<1x286xf32>
    %45 = vector.broadcast %44 : vector<1x286xf32> to vector<32x286xf32>
    %46 = arith.mulf %43, %45 : vector<32x286xf32>
    %cst_39 = arith.constant dense<0.000000e+00> : vector<32xf32>
    %47 = vector.multi_reduction <add>, %46, %cst_39 [1] : vector<32x286xf32> to vector<32xf32>
    %48 = vector.shape_cast %47 : vector<32xf32> to vector<32x1xf32>
    %c0_40 = arith.constant 0 : index
    %c0_41 = arith.constant 0 : index
    %c0_42 = arith.constant 0 : index
    %49 = vector.load %arg4[%c0_40, %c0_41, %c0_42] : memref<1x32x1xf32, #tpu.memory_space<vmem>>, vector<1x32x1xf32>
    %50 = vector.shape_cast %49 : vector<1x32x1xf32> to vector<32x1xf32>
    %51 = vector.shape_cast %48 : vector<32x1xf32> to vector<1x32x1xf32>
    tpu.vector_store %arg4[%c0_40, %c0_41, %c0_42], %51 {strides = array<i32>} : memref<1x32x1xf32, #tpu.memory_space<vmem>>, vector<1x32x1xf32>,
    %52 = arith.mulf %46, %43 : vector<32x286xf32>
    %cst_43 = arith.constant dense<0.000000e+00> : vector<32xf32>
    %53 = vector.multi_reduction <add>, %52, %cst_43 [1] : vector<32x286xf32> to vector<32xf32>
    %54 = vector.shape_cast %53 : vector<32xf32> to vector<32x1xf32>
    %c0_44 = arith.constant 0 : index
    %c0_45 = arith.constant 0 : index
    %c0_46 = arith.constant 0 : index
    %55 = vector.load %arg5[%c0_44, %c0_45, %c0_46] : memref<1x32x1xf32, #tpu.memory_space<vmem>>, vector<1x32x1xf32>
    %56 = vector.shape_cast %55 : vector<1x32x1xf32> to vector<32x1xf32>
    %57 = vector.shape_cast %54 : vector<32x1xf32> to vector<1x32x1xf32>
    tpu.vector_store %arg5[%c0_44, %c0_45, %c0_46], %57 {strides = array<i32>} : memref<1x32x1xf32, #tpu.memory_space<vmem>>, vector<1x32x1xf32>,
    return
  }
  func.func @transform_0(%arg0: i32) -> (i32, i32, i32) {
    %c0_i32 = arith.constant 0 : i32
    %c0_i32_0 = arith.constant 0 : i32
    %c0_i32_1 = arith.constant 0 : i32
    return %arg0, %c0_i32, %c0_i32_0 : i32, i32, i32
  }
  func.func @transform_1(%arg0: i32) -> (i32, i32) {
    %c0_i32 = arith.constant 0 : i32
    %c0_i32_0 = arith.constant 0 : i32
    %c0_i32_1 = arith.constant 0 : i32
    return %c0_i32, %c0_i32_0 : i32, i32
  }
  func.func @transform_2(%arg0: i32) -> (i32, i32) {
    %c0_i32 = arith.constant 0 : i32
    %c0_i32_0 = arith.constant 0 : i32
    %c0_i32_1 = arith.constant 0 : i32
    return %c0_i32, %c0_i32_0 : i32, i32
  }
  func.func @transform_3(%arg0: i32) -> (i32, i32, i32) {
    %c0_i32 = arith.constant 0 : i32
    %c0_i32_0 = arith.constant 0 : i32
    %c0_i32_1 = arith.constant 0 : i32
    return %arg0, %c0_i32, %c0_i32_0 : i32, i32, i32
  }
  func.func @transform_4(%arg0: i32) -> (i32, i32, i32) {
    %c0_i32 = arith.constant 0 : i32
    %c0_i32_0 = arith.constant 0 : i32
    %c0_i32_1 = arith.constant 0 : i32
    return %arg0, %c0_i32, %c0_i32_0 : i32, i32, i32
  }
}

module attributes {stable_mosaic.version = 11 : i64} {
  func.func @out_kernel(%arg0: i32, %arg1: memref<1x4x324xf32, #tpu.memory_space<vmem>>, %arg2: memref<32x36xf32, #tpu.memory_space<vmem>>, %arg3: memref<32x1xf32, #tpu.memory_space<vmem>>, %arg4: memref<1x32x256xf32, #tpu.memory_space<vmem>>) attributes {dimension_semantics = [#tpu.dimension_semantics<parallel>], iteration_bounds = array<i64: 2>, scalar_prefetch = 0 : i64, scratch_operands = 0 : i64, tpu.core_type = #tpu.core_type<tc>, window_params = [{transform_indices = @transform_0, window_bounds = array<i64: 1, 4, 324>}, {pipeline_mode = #tpu.pipeline_mode<synchronous>, transform_indices = @transform_1, window_bounds = array<i64: 32, 36>}, {pipeline_mode = #tpu.pipeline_mode<synchronous>, transform_indices = @transform_2, window_bounds = array<i64: 32, 1>}, {transform_indices = @transform_3, window_bounds = array<i64: 1, 32, 256>}]} {
    %c0 = arith.constant 0 : index
    %c0_0 = arith.constant 0 : index
    %c0_1 = arith.constant 0 : index
    %0 = vector.load %arg1[%c0, %c0_0, %c0_1] : memref<1x4x324xf32, #tpu.memory_space<vmem>>, vector<1x4x286xf32>
    %1 = vector.shape_cast %0 : vector<1x4x286xf32> to vector<4x286xf32>
    %c0_2 = arith.constant 0 : index
    %c0_3 = arith.constant 0 : index
    %2 = vector.load %arg2[%c0_2, %c0_3] : memref<32x36xf32, #tpu.memory_space<vmem>>, vector<32x4xf32>
    %cst = arith.constant dense<0.000000e+00> : vector<32x286xf32>
    %3 = tpu.matmul %2, %1, %cst {dimension_numbers = #tpu.dot_dimension_numbers<[1], [0], [0], [1], [0, 0, 1, 1], [], []>} : vector<32x4xf32>, vector<4x286xf32>, vector<32x286xf32> -> vector<32x286xf32>
    %c0_4 = arith.constant 0 : index
    %c0_5 = arith.constant 0 : index
    %c1 = arith.constant 1 : index
    %4 = vector.load %arg1[%c0_4, %c0_5, %c1] : memref<1x4x324xf32, #tpu.memory_space<vmem>>, vector<1x4x286xf32>
    %5 = vector.shape_cast %4 : vector<1x4x286xf32> to vector<4x286xf32>
    %c0_6 = arith.constant 0 : index
    %c4 = arith.constant 4 : index
    %6 = vector.load %arg2[%c0_6, %c4] : memref<32x36xf32, #tpu.memory_space<vmem>>, vector<32x4xf32>
    %cst_7 = arith.constant dense<0.000000e+00> : vector<32x286xf32>
    %7 = tpu.matmul %6, %5, %cst_7 {dimension_numbers = #tpu.dot_dimension_numbers<[1], [0], [0], [1], [0, 0, 1, 1], [], []>} : vector<32x4xf32>, vector<4x286xf32>, vector<32x286xf32> -> vector<32x286xf32>
    %8 = arith.addf %3, %7 : vector<32x286xf32>
    %c0_8 = arith.constant 0 : index
    %c0_9 = arith.constant 0 : index
    %c2 = arith.constant 2 : index
    %9 = vector.load %arg1[%c0_8, %c0_9, %c2] : memref<1x4x324xf32, #tpu.memory_space<vmem>>, vector<1x4x286xf32>
    %10 = vector.shape_cast %9 : vector<1x4x286xf32> to vector<4x286xf32>
    %c0_10 = arith.constant 0 : index
    %c8 = arith.constant 8 : index
    %11 = vector.load %arg2[%c0_10, %c8] : memref<32x36xf32, #tpu.memory_space<vmem>>, vector<32x4xf32>
    %cst_11 = arith.constant dense<0.000000e+00> : vector<32x286xf32>
    %12 = tpu.matmul %11, %10, %cst_11 {dimension_numbers = #tpu.dot_dimension_numbers<[1], [0], [0], [1], [0, 0, 1, 1], [], []>} : vector<32x4xf32>, vector<4x286xf32>, vector<32x286xf32> -> vector<32x286xf32>
    %13 = arith.addf %8, %12 : vector<32x286xf32>
    %c0_12 = arith.constant 0 : index
    %c0_13 = arith.constant 0 : index
    %c18 = arith.constant 18 : index
    %14 = vector.load %arg1[%c0_12, %c0_13, %c18] : memref<1x4x324xf32, #tpu.memory_space<vmem>>, vector<1x4x286xf32>
    %15 = vector.shape_cast %14 : vector<1x4x286xf32> to vector<4x286xf32>
    %c0_14 = arith.constant 0 : index
    %c12 = arith.constant 12 : index
    %16 = vector.load %arg2[%c0_14, %c12] : memref<32x36xf32, #tpu.memory_space<vmem>>, vector<32x4xf32>
    %cst_15 = arith.constant dense<0.000000e+00> : vector<32x286xf32>
    %17 = tpu.matmul %16, %15, %cst_15 {dimension_numbers = #tpu.dot_dimension_numbers<[1], [0], [0], [1], [0, 0, 1, 1], [], []>} : vector<32x4xf32>, vector<4x286xf32>, vector<32x286xf32> -> vector<32x286xf32>
    %18 = arith.addf %13, %17 : vector<32x286xf32>
    %c0_16 = arith.constant 0 : index
    %c0_17 = arith.constant 0 : index
    %c19 = arith.constant 19 : index
    %19 = vector.load %arg1[%c0_16, %c0_17, %c19] : memref<1x4x324xf32, #tpu.memory_space<vmem>>, vector<1x4x286xf32>
    %20 = vector.shape_cast %19 : vector<1x4x286xf32> to vector<4x286xf32>
    %c0_18 = arith.constant 0 : index
    %c16 = arith.constant 16 : index
    %21 = vector.load %arg2[%c0_18, %c16] : memref<32x36xf32, #tpu.memory_space<vmem>>, vector<32x4xf32>
    %cst_19 = arith.constant dense<0.000000e+00> : vector<32x286xf32>
    %22 = tpu.matmul %21, %20, %cst_19 {dimension_numbers = #tpu.dot_dimension_numbers<[1], [0], [0], [1], [0, 0, 1, 1], [], []>} : vector<32x4xf32>, vector<4x286xf32>, vector<32x286xf32> -> vector<32x286xf32>
    %23 = arith.addf %18, %22 : vector<32x286xf32>
    %c0_20 = arith.constant 0 : index
    %c0_21 = arith.constant 0 : index
    %c20 = arith.constant 20 : index
    %24 = vector.load %arg1[%c0_20, %c0_21, %c20] : memref<1x4x324xf32, #tpu.memory_space<vmem>>, vector<1x4x286xf32>
    %25 = vector.shape_cast %24 : vector<1x4x286xf32> to vector<4x286xf32>
    %c0_22 = arith.constant 0 : index
    %c20_23 = arith.constant 20 : index
    %26 = vector.load %arg2[%c0_22, %c20_23] : memref<32x36xf32, #tpu.memory_space<vmem>>, vector<32x4xf32>
    %cst_24 = arith.constant dense<0.000000e+00> : vector<32x286xf32>
    %27 = tpu.matmul %26, %25, %cst_24 {dimension_numbers = #tpu.dot_dimension_numbers<[1], [0], [0], [1], [0, 0, 1, 1], [], []>} : vector<32x4xf32>, vector<4x286xf32>, vector<32x286xf32> -> vector<32x286xf32>
    %28 = arith.addf %23, %27 : vector<32x286xf32>
    %c0_25 = arith.constant 0 : index
    %c0_26 = arith.constant 0 : index
    %c36 = arith.constant 36 : index
    %29 = vector.load %arg1[%c0_25, %c0_26, %c36] : memref<1x4x324xf32, #tpu.memory_space<vmem>>, vector<1x4x286xf32>
    %30 = vector.shape_cast %29 : vector<1x4x286xf32> to vector<4x286xf32>
    %c0_27 = arith.constant 0 : index
    %c24 = arith.constant 24 : index
    %31 = vector.load %arg2[%c0_27, %c24] : memref<32x36xf32, #tpu.memory_space<vmem>>, vector<32x4xf32>
    %cst_28 = arith.constant dense<0.000000e+00> : vector<32x286xf32>
    %32 = tpu.matmul %31, %30, %cst_28 {dimension_numbers = #tpu.dot_dimension_numbers<[1], [0], [0], [1], [0, 0, 1, 1], [], []>} : vector<32x4xf32>, vector<4x286xf32>, vector<32x286xf32> -> vector<32x286xf32>
    %33 = arith.addf %28, %32 : vector<32x286xf32>
    %c0_29 = arith.constant 0 : index
    %c0_30 = arith.constant 0 : index
    %c37 = arith.constant 37 : index
    %34 = vector.load %arg1[%c0_29, %c0_30, %c37] : memref<1x4x324xf32, #tpu.memory_space<vmem>>, vector<1x4x286xf32>
    %35 = vector.shape_cast %34 : vector<1x4x286xf32> to vector<4x286xf32>
    %c0_31 = arith.constant 0 : index
    %c28 = arith.constant 28 : index
    %36 = vector.load %arg2[%c0_31, %c28] : memref<32x36xf32, #tpu.memory_space<vmem>>, vector<32x4xf32>
    %cst_32 = arith.constant dense<0.000000e+00> : vector<32x286xf32>
    %37 = tpu.matmul %36, %35, %cst_32 {dimension_numbers = #tpu.dot_dimension_numbers<[1], [0], [0], [1], [0, 0, 1, 1], [], []>} : vector<32x4xf32>, vector<4x286xf32>, vector<32x286xf32> -> vector<32x286xf32>
    %38 = arith.addf %33, %37 : vector<32x286xf32>
    %c0_33 = arith.constant 0 : index
    %c0_34 = arith.constant 0 : index
    %c38 = arith.constant 38 : index
    %39 = vector.load %arg1[%c0_33, %c0_34, %c38] : memref<1x4x324xf32, #tpu.memory_space<vmem>>, vector<1x4x286xf32>
    %40 = vector.shape_cast %39 : vector<1x4x286xf32> to vector<4x286xf32>
    %c0_35 = arith.constant 0 : index
    %c32 = arith.constant 32 : index
    %41 = vector.load %arg2[%c0_35, %c32] : memref<32x36xf32, #tpu.memory_space<vmem>>, vector<32x4xf32>
    %cst_36 = arith.constant dense<0.000000e+00> : vector<32x286xf32>
    %42 = tpu.matmul %41, %40, %cst_36 {dimension_numbers = #tpu.dot_dimension_numbers<[1], [0], [0], [1], [0, 0, 1, 1], [], []>} : vector<32x4xf32>, vector<4x286xf32>, vector<32x286xf32> -> vector<32x286xf32>
    %43 = arith.addf %38, %42 : vector<32x286xf32>
    %c0_37 = arith.constant 0 : index
    %c0_38 = arith.constant 0 : index
    %44 = vector.load %arg3[%c0_37, %c0_38] : memref<32x1xf32, #tpu.memory_space<vmem>>, vector<32x1xf32>
    %45 = vector.broadcast %44 : vector<32x1xf32> to vector<32x286xf32>
    %46 = arith.addf %43, %45 : vector<32x286xf32>
    %cst_39 = arith.constant 0.000000e+00 : f32
    %47 = vector.broadcast %cst_39 : f32 to vector<32x286xf32>
    %48 = arith.maximumf %46, %47 : vector<32x286xf32>
    %49 = vector.extract_strided_slice %48 {offsets = [0, 0], sizes = [32, 16], strides = [1, 1]} : vector<32x286xf32> to vector<32x16xf32>
    %c0_40 = arith.constant 0 : index
    %c0_41 = arith.constant 0 : index
    %c0_42 = arith.constant 0 : index
    %50 = vector.load %arg4[%c0_40, %c0_41, %c0_42] : memref<1x32x256xf32, #tpu.memory_space<vmem>>, vector<1x32x16xf32>
    %51 = vector.shape_cast %50 : vector<1x32x16xf32> to vector<32x16xf32>
    %52 = vector.shape_cast %49 : vector<32x16xf32> to vector<1x32x16xf32>
    tpu.vector_store %arg4[%c0_40, %c0_41, %c0_42], %52 {strides = array<i32>} : memref<1x32x256xf32, #tpu.memory_space<vmem>>, vector<1x32x16xf32>,
    %53 = vector.extract_strided_slice %48 {offsets = [0, 18], sizes = [32, 16], strides = [1, 1]} : vector<32x286xf32> to vector<32x16xf32>
    %c0_43 = arith.constant 0 : index
    %c0_44 = arith.constant 0 : index
    %c16_45 = arith.constant 16 : index
    %54 = vector.load %arg4[%c0_43, %c0_44, %c16_45] : memref<1x32x256xf32, #tpu.memory_space<vmem>>, vector<1x32x16xf32>
    %55 = vector.shape_cast %54 : vector<1x32x16xf32> to vector<32x16xf32>
    %56 = vector.shape_cast %53 : vector<32x16xf32> to vector<1x32x16xf32>
    tpu.vector_store %arg4[%c0_43, %c0_44, %c16_45], %56 {strides = array<i32>} : memref<1x32x256xf32, #tpu.memory_space<vmem>>, vector<1x32x16xf32>,
    %57 = vector.extract_strided_slice %48 {offsets = [0, 36], sizes = [32, 16], strides = [1, 1]} : vector<32x286xf32> to vector<32x16xf32>
    %c0_46 = arith.constant 0 : index
    %c0_47 = arith.constant 0 : index
    %c32_48 = arith.constant 32 : index
    %58 = vector.load %arg4[%c0_46, %c0_47, %c32_48] : memref<1x32x256xf32, #tpu.memory_space<vmem>>, vector<1x32x16xf32>
    %59 = vector.shape_cast %58 : vector<1x32x16xf32> to vector<32x16xf32>
    %60 = vector.shape_cast %57 : vector<32x16xf32> to vector<1x32x16xf32>
    tpu.vector_store %arg4[%c0_46, %c0_47, %c32_48], %60 {strides = array<i32>} : memref<1x32x256xf32, #tpu.memory_space<vmem>>, vector<1x32x16xf32>,
    %61 = vector.extract_strided_slice %48 {offsets = [0, 54], sizes = [32, 16], strides = [1, 1]} : vector<32x286xf32> to vector<32x16xf32>
    %c0_49 = arith.constant 0 : index
    %c0_50 = arith.constant 0 : index
    %c48 = arith.constant 48 : index
    %62 = vector.load %arg4[%c0_49, %c0_50, %c48] : memref<1x32x256xf32, #tpu.memory_space<vmem>>, vector<1x32x16xf32>
    %63 = vector.shape_cast %62 : vector<1x32x16xf32> to vector<32x16xf32>
    %64 = vector.shape_cast %61 : vector<32x16xf32> to vector<1x32x16xf32>
    tpu.vector_store %arg4[%c0_49, %c0_50, %c48], %64 {strides = array<i32>} : memref<1x32x256xf32, #tpu.memory_space<vmem>>, vector<1x32x16xf32>,
    %65 = vector.extract_strided_slice %48 {offsets = [0, 72], sizes = [32, 16], strides = [1, 1]} : vector<32x286xf32> to vector<32x16xf32>
    %c0_51 = arith.constant 0 : index
    %c0_52 = arith.constant 0 : index
    %c64 = arith.constant 64 : index
    %66 = vector.load %arg4[%c0_51, %c0_52, %c64] : memref<1x32x256xf32, #tpu.memory_space<vmem>>, vector<1x32x16xf32>
    %67 = vector.shape_cast %66 : vector<1x32x16xf32> to vector<32x16xf32>
    %68 = vector.shape_cast %65 : vector<32x16xf32> to vector<1x32x16xf32>
    tpu.vector_store %arg4[%c0_51, %c0_52, %c64], %68 {strides = array<i32>} : memref<1x32x256xf32, #tpu.memory_space<vmem>>, vector<1x32x16xf32>,
    %69 = vector.extract_strided_slice %48 {offsets = [0, 90], sizes = [32, 16], strides = [1, 1]} : vector<32x286xf32> to vector<32x16xf32>
    %c0_53 = arith.constant 0 : index
    %c0_54 = arith.constant 0 : index
    %c80 = arith.constant 80 : index
    %70 = vector.load %arg4[%c0_53, %c0_54, %c80] : memref<1x32x256xf32, #tpu.memory_space<vmem>>, vector<1x32x16xf32>
    %71 = vector.shape_cast %70 : vector<1x32x16xf32> to vector<32x16xf32>
    %72 = vector.shape_cast %69 : vector<32x16xf32> to vector<1x32x16xf32>
    tpu.vector_store %arg4[%c0_53, %c0_54, %c80], %72 {strides = array<i32>} : memref<1x32x256xf32, #tpu.memory_space<vmem>>, vector<1x32x16xf32>,
    %73 = vector.extract_strided_slice %48 {offsets = [0, 108], sizes = [32, 16], strides = [1, 1]} : vector<32x286xf32> to vector<32x16xf32>
    %c0_55 = arith.constant 0 : index
    %c0_56 = arith.constant 0 : index
    %c96 = arith.constant 96 : index
    %74 = vector.load %arg4[%c0_55, %c0_56, %c96] : memref<1x32x256xf32, #tpu.memory_space<vmem>>, vector<1x32x16xf32>
    %75 = vector.shape_cast %74 : vector<1x32x16xf32> to vector<32x16xf32>
    %76 = vector.shape_cast %73 : vector<32x16xf32> to vector<1x32x16xf32>
    tpu.vector_store %arg4[%c0_55, %c0_56, %c96], %76 {strides = array<i32>} : memref<1x32x256xf32, #tpu.memory_space<vmem>>, vector<1x32x16xf32>,
    %77 = vector.extract_strided_slice %48 {offsets = [0, 126], sizes = [32, 16], strides = [1, 1]} : vector<32x286xf32> to vector<32x16xf32>
    %c0_57 = arith.constant 0 : index
    %c0_58 = arith.constant 0 : index
    %c112 = arith.constant 112 : index
    %78 = vector.load %arg4[%c0_57, %c0_58, %c112] : memref<1x32x256xf32, #tpu.memory_space<vmem>>, vector<1x32x16xf32>
    %79 = vector.shape_cast %78 : vector<1x32x16xf32> to vector<32x16xf32>
    %80 = vector.shape_cast %77 : vector<32x16xf32> to vector<1x32x16xf32>
    tpu.vector_store %arg4[%c0_57, %c0_58, %c112], %80 {strides = array<i32>} : memref<1x32x256xf32, #tpu.memory_space<vmem>>, vector<1x32x16xf32>,
    %81 = vector.extract_strided_slice %48 {offsets = [0, 144], sizes = [32, 16], strides = [1, 1]} : vector<32x286xf32> to vector<32x16xf32>
    %c0_59 = arith.constant 0 : index
    %c0_60 = arith.constant 0 : index
    %c128 = arith.constant 128 : index
    %82 = vector.load %arg4[%c0_59, %c0_60, %c128] : memref<1x32x256xf32, #tpu.memory_space<vmem>>, vector<1x32x16xf32>
    %83 = vector.shape_cast %82 : vector<1x32x16xf32> to vector<32x16xf32>
    %84 = vector.shape_cast %81 : vector<32x16xf32> to vector<1x32x16xf32>
    tpu.vector_store %arg4[%c0_59, %c0_60, %c128], %84 {strides = array<i32>} : memref<1x32x256xf32, #tpu.memory_space<vmem>>, vector<1x32x16xf32>,
    %85 = vector.extract_strided_slice %48 {offsets = [0, 162], sizes = [32, 16], strides = [1, 1]} : vector<32x286xf32> to vector<32x16xf32>
    %c0_61 = arith.constant 0 : index
    %c0_62 = arith.constant 0 : index
    %c144 = arith.constant 144 : index
    %86 = vector.load %arg4[%c0_61, %c0_62, %c144] : memref<1x32x256xf32, #tpu.memory_space<vmem>>, vector<1x32x16xf32>
    %87 = vector.shape_cast %86 : vector<1x32x16xf32> to vector<32x16xf32>
    %88 = vector.shape_cast %85 : vector<32x16xf32> to vector<1x32x16xf32>
    tpu.vector_store %arg4[%c0_61, %c0_62, %c144], %88 {strides = array<i32>} : memref<1x32x256xf32, #tpu.memory_space<vmem>>, vector<1x32x16xf32>,
    %89 = vector.extract_strided_slice %48 {offsets = [0, 180], sizes = [32, 16], strides = [1, 1]} : vector<32x286xf32> to vector<32x16xf32>
    %c0_63 = arith.constant 0 : index
    %c0_64 = arith.constant 0 : index
    %c160 = arith.constant 160 : index
    %90 = vector.load %arg4[%c0_63, %c0_64, %c160] : memref<1x32x256xf32, #tpu.memory_space<vmem>>, vector<1x32x16xf32>
    %91 = vector.shape_cast %90 : vector<1x32x16xf32> to vector<32x16xf32>
    %92 = vector.shape_cast %89 : vector<32x16xf32> to vector<1x32x16xf32>
    tpu.vector_store %arg4[%c0_63, %c0_64, %c160], %92 {strides = array<i32>} : memref<1x32x256xf32, #tpu.memory_space<vmem>>, vector<1x32x16xf32>,
    %93 = vector.extract_strided_slice %48 {offsets = [0, 198], sizes = [32, 16], strides = [1, 1]} : vector<32x286xf32> to vector<32x16xf32>
    %c0_65 = arith.constant 0 : index
    %c0_66 = arith.constant 0 : index
    %c176 = arith.constant 176 : index
    %94 = vector.load %arg4[%c0_65, %c0_66, %c176] : memref<1x32x256xf32, #tpu.memory_space<vmem>>, vector<1x32x16xf32>
    %95 = vector.shape_cast %94 : vector<1x32x16xf32> to vector<32x16xf32>
    %96 = vector.shape_cast %93 : vector<32x16xf32> to vector<1x32x16xf32>
    tpu.vector_store %arg4[%c0_65, %c0_66, %c176], %96 {strides = array<i32>} : memref<1x32x256xf32, #tpu.memory_space<vmem>>, vector<1x32x16xf32>,
    %97 = vector.extract_strided_slice %48 {offsets = [0, 216], sizes = [32, 16], strides = [1, 1]} : vector<32x286xf32> to vector<32x16xf32>
    %c0_67 = arith.constant 0 : index
    %c0_68 = arith.constant 0 : index
    %c192 = arith.constant 192 : index
    %98 = vector.load %arg4[%c0_67, %c0_68, %c192] : memref<1x32x256xf32, #tpu.memory_space<vmem>>, vector<1x32x16xf32>
    %99 = vector.shape_cast %98 : vector<1x32x16xf32> to vector<32x16xf32>
    %100 = vector.shape_cast %97 : vector<32x16xf32> to vector<1x32x16xf32>
    tpu.vector_store %arg4[%c0_67, %c0_68, %c192], %100 {strides = array<i32>} : memref<1x32x256xf32, #tpu.memory_space<vmem>>, vector<1x32x16xf32>,
    %101 = vector.extract_strided_slice %48 {offsets = [0, 234], sizes = [32, 16], strides = [1, 1]} : vector<32x286xf32> to vector<32x16xf32>
    %c0_69 = arith.constant 0 : index
    %c0_70 = arith.constant 0 : index
    %c208 = arith.constant 208 : index
    %102 = vector.load %arg4[%c0_69, %c0_70, %c208] : memref<1x32x256xf32, #tpu.memory_space<vmem>>, vector<1x32x16xf32>
    %103 = vector.shape_cast %102 : vector<1x32x16xf32> to vector<32x16xf32>
    %104 = vector.shape_cast %101 : vector<32x16xf32> to vector<1x32x16xf32>
    tpu.vector_store %arg4[%c0_69, %c0_70, %c208], %104 {strides = array<i32>} : memref<1x32x256xf32, #tpu.memory_space<vmem>>, vector<1x32x16xf32>,
    %105 = vector.extract_strided_slice %48 {offsets = [0, 252], sizes = [32, 16], strides = [1, 1]} : vector<32x286xf32> to vector<32x16xf32>
    %c0_71 = arith.constant 0 : index
    %c0_72 = arith.constant 0 : index
    %c224 = arith.constant 224 : index
    %106 = vector.load %arg4[%c0_71, %c0_72, %c224] : memref<1x32x256xf32, #tpu.memory_space<vmem>>, vector<1x32x16xf32>
    %107 = vector.shape_cast %106 : vector<1x32x16xf32> to vector<32x16xf32>
    %108 = vector.shape_cast %105 : vector<32x16xf32> to vector<1x32x16xf32>
    tpu.vector_store %arg4[%c0_71, %c0_72, %c224], %108 {strides = array<i32>} : memref<1x32x256xf32, #tpu.memory_space<vmem>>, vector<1x32x16xf32>,
    %109 = vector.extract_strided_slice %48 {offsets = [0, 270], sizes = [32, 16], strides = [1, 1]} : vector<32x286xf32> to vector<32x16xf32>
    %c0_73 = arith.constant 0 : index
    %c0_74 = arith.constant 0 : index
    %c240 = arith.constant 240 : index
    %110 = vector.load %arg4[%c0_73, %c0_74, %c240] : memref<1x32x256xf32, #tpu.memory_space<vmem>>, vector<1x32x16xf32>
    %111 = vector.shape_cast %110 : vector<1x32x16xf32> to vector<32x16xf32>
    %112 = vector.shape_cast %109 : vector<32x16xf32> to vector<1x32x16xf32>
    tpu.vector_store %arg4[%c0_73, %c0_74, %c240], %112 {strides = array<i32>} : memref<1x32x256xf32, #tpu.memory_space<vmem>>, vector<1x32x16xf32>,
    return
  }
  func.func @transform_0(%arg0: i32) -> (i32, i32, i32) {
    %c0_i32 = arith.constant 0 : i32
    %c0_i32_0 = arith.constant 0 : i32
    %c0_i32_1 = arith.constant 0 : i32
    return %arg0, %c0_i32, %c0_i32_0 : i32, i32, i32
  }
  func.func @transform_1(%arg0: i32) -> (i32, i32) {
    %c0_i32 = arith.constant 0 : i32
    %c0_i32_0 = arith.constant 0 : i32
    %c0_i32_1 = arith.constant 0 : i32
    return %c0_i32, %c0_i32_0 : i32, i32
  }
  func.func @transform_2(%arg0: i32) -> (i32, i32) {
    %c0_i32 = arith.constant 0 : i32
    %c0_i32_0 = arith.constant 0 : i32
    %c0_i32_1 = arith.constant 0 : i32
    return %c0_i32, %c0_i32_0 : i32, i32
  }
  func.func @transform_3(%arg0: i32) -> (i32, i32, i32) {
    %c0_i32 = arith.constant 0 : i32
    %c0_i32_0 = arith.constant 0 : i32
    %c0_i32_1 = arith.constant 0 : i32
    return %arg0, %c0_i32, %c0_i32_0 : i32, i32, i32
  }
}

</mosaic_0001>

<bundles_post_ra>
// kernel: layer1_forward.2
= control target key start
LH: loop header
LB: loop body
LE: loop exit
PB: predicated region body
PF: predicated region fallthrough
CT: control target
= control target key end

     0   :  { %s1886_s15 = smov 0   ;;  %s2359_s0 = inlined_call_operand.vmem [shape: f32[2,4,324], index: 0, kind: input, shape index: {}]   ;;  %s2360_s1 = inlined_call_operand.vmem [shape: f32[32,36], index: 1, kind: input, shape index: {}]   ;;  %s2361_s2 = inlined_call_operand.vmem [shape: f32[1,286], index: 2, kind: input, shape index: {}]   ;;  %s2362_s3 = inlined_call_operand.vmem [shape: f32[2,32,1], index: 3, kind: output, shape index: {0}]   ;;  %s2363_s4 = inlined_call_operand.vmem [shape: f32[2,32,1], index: 4, kind: output, shape index: {1}]  }
   0x1 LB: > { %s1662_s16 = sadd.s32 4294967295, %s1844_s15   ;;  %p1666_p0 = scmp.ge.s32.totalorder %s1844_s15, 1  ;;  %s1844_s15 = sphi %s1886_s15, %s15_s15  }
   0x2   : > { %p165_p1 = scmp.lt.s32.totalorder %s1844_s15, 3 }
   0x4   : > { %p166_p2 = pnand %p1666_p0, %p165_p1 }
   0x5   : > { %p196_p3 = scmp.lt.s32.totalorder (!%p166_p2), %s1662_s16, 1  ;;  %s1846_s19 = smov (!%p166_p2), 124  }
   0x6   : > { %169 = sbr.rel (%p166_p2) target bundleno = 625 (0x271), region = 32  ;;  %s1847_s28 = smov (!%p166_p2), 127  }
   0x7   : > { %s1848_s5 = smov (!%p166_p2), 126   ;;  %s1849_s6 = smov (!%p166_p2), 120  }
   0x8   : > { %s1850_s7 = smov (!%p166_p2), 110   ;;  %s1851_s8 = smov (!%p166_p2), 116  }
   0x9   : > { %s1852_s9 = smov (!%p166_p2), 109   ;;  %s1853_s10 = smov (!%p166_p2), 112  }
   0xa   : > { %s1854_s11 = smov (!%p166_p2), 108   ;;  %s1855_s12 = smov (!%p166_p2), 92  }
   0xb   : > { %v1897_v0 = vld [vmem:[%s2360_s1 + $0x8] sm:$0xff]  ;;  %s2365_s16 = smov (!%p196_p3, %s1662_s16), 1  ;;  %v1906_v1 = vld [vmem:[%s2360_s1] sm:$0xff]  ;;  %v1924_v4 = vld [vmem:[%s2360_s1 + $0x10] sm:$0xff]  ;;  %s1856_s13 = smov 104   ;;  %vm255_vm0 = vcmask 1043456  }
   0xc   : > { %223 = vrot.lane.b32.xlu1 %v1897_v0, %s1846_s19  ;;  %221 = vrot.lane.b32.xlu2 %v1906_v1, %s1846_s19  ;;  %s1814_s22 = smul.u32 12, %s2365_s16  ;;  %v1941_v13 = vld [vmem:[%s2360_s1 + $0x18] sm:$0xff]  ;;  %vm246_vm1 = vcmask 31744   ;;  %s1857_s14 = smov 91   ;;  %vm243_vm2 = vcmask 1039360   ;;  %vm488_vm3 = vcmask 1031168  }
   0xd   : > { %s1858_s17 = smov 100   ;;  %s1859_s18 = smov 90   ;;  %vm636_vm4 = vcmask 900096   ;;  %vm784_vm5 = vcmask 891904   ;;  %vm932_vm6 = vcmask 883712   ;;  %vm1080_vm7 = vcmask 752640  }
   0xe   : > { %s1914_s25 = scalar_lea.vmem %s2359_s0, %s1814_s22  ;;  %vm1228_vm8 = vcmask 744448   ;;  %vm1376_vm9 = vcmask 736256   ;;  %vm1513_vm10 = vcmask 244736   ;;  %s1809_s22 = sshll.u32 %s2365_s16, 5  ;;  %vm1533_vm11 = vcmask 7168  }
   0xf   : > { %v212_v2 = vld [vmem:[%s1914_s25 + $0x8] sm:$0xf]  ;;  %v1918_v3 = vld [vmem:[%s1914_s25] sm:$0xff] }
  0x10   : > { %233 = vst [vmem:[#allocation1 + $0x10] ss:$2 sm:$0xff] %v212_v2  ;;  %v457_v8 = vld [vmem:[%s1914_s25 + $0x8] sm:$0xf] }
  0x11   : > { %231 = vst [vmem:[#allocation1] ss:$2 sm:$0xff] %v1918_v3  ;;  %v605_v12 = vld [vmem:[%s1914_s25 + $0x8] sm:$0xf] }
  0x12   : > { %v753_v17 = vld [vmem:[%s1914_s25 + $0x8] sm:$0xf] }
  0x13   : > { %v901_v21 = vld [vmem:[%s1914_s25 + $0x8] sm:$0xf] }
  0x14   : > { %225 = vrot.lane.b32.xlu2 %v1924_v4, %s1846_s19  ;;  %v1049_v28 = vld [vmem:[%s1914_s25 + $0x8] sm:$0xf] }
  0x15   : > { %v1197_v33 = vld [vmem:[%s1914_s25 + $0x8] sm:$0xf] }
  0x16   : > { %v1345_v37 = vld [vmem:[%s1914_s25 + $0x8] sm:$0xf]  ;;  %s205_s25 = scalar_lea.vmem %s2362_s3, %s1809_s22 }
  0x17   : > { %v236_v5 = vld.sshfl [vmem:[#allocation1 + $0x10] sm:$0xff pattern:$0x75316420] }
  0x18   : > { %241 = vrot.lane.b32.xlu1 %v236_v5, %s1847_s28  ;;  %351 = vst [vmem:[#allocation1 + $0x10] ss:$2 sm:$0xff] %v212_v2  ;;  %v234_v6 = vld.sshfl [vmem:[#allocation1] sm:$0xff pattern:$0x75316420] }
  0x19   : > { %237 = vrot.lane.b32.xlu0 %v234_v6, %s1847_s28  ;;  %v235_v7 = vld.sshfl [vmem:[#allocation1 + $0x8] sm:$0xff pattern:$0x75316420] }
  0x1a   : > { %349 = vst [vmem:[#allocation1] ss:$2 sm:$0xff] %v1918_v3 }
  0x1f   : > { %v1930_v9 = vld.sshfl [vmem:[#allocation1 + $0x10] sm:$0xff pattern:$0x75316420] }
  0x20   : > { %478 = vst [vmem:[#allocation1 + $0x10] ss:$2 sm:$0xff] %v457_v8 }
  0x21   : > { %239 = vrot.lane.b32.xlu0 %v235_v7, %s1847_s28  ;;  %v1932_v10 = vld.sshfl [vmem:[#allocation1] sm:$0xff pattern:$0x75316420]  ;;  %v1934_v11 = vld.sshfl [vmem:[#allocation1 + $0x8] sm:$0xff pattern:$0x75316420]  ;;  %s210_s28 = scalar_lea.vmem %s2363_s4, %s1809_s22 }
  0x22   : > { %476 = vst [vmem:[#allocation1] ss:$2 sm:$0xff] %v1918_v3 }
  0x27   : > { %v481_v14 = vld.sshfl [vmem:[#allocation1 + $0x10] sm:$0xff pattern:$0x75316420] }
  0x28   : > { %626 = vst [vmem:[#allocation1 + $0x10] ss:$2 sm:$0xff] %v605_v12 }
  0x29   : > { %227 = vrot.lane.b32.xlu0 %v1941_v13, %s1846_s19  ;;  %v479_v15 = vld.sshfl [vmem:[#allocation1] sm:$0xff pattern:$0x75316420]  ;;  %v480_v16 = vld.sshfl [vmem:[#allocation1 + $0x8] sm:$0xff pattern:$0x75316420] }
  0x2a   : > { %482 = vrot.lane.b32.xlu1 %v479_v15, %s1848_s5  ;;  %484 = vrot.lane.b32.xlu2 %v480_v16, %s1848_s5  ;;  %624 = vst [vmem:[#allocation1] ss:$2 sm:$0xff] %v1918_v3  ;;  %s1860_s19 = smov 96  }
  0x2f   : > { %v629_v18 = vld.sshfl [vmem:[#allocation1 + $0x10] sm:$0xff pattern:$0x75316420] }
  0x30   : > { %774 = vst [vmem:[#allocation1 + $0x10] ss:$2 sm:$0xff] %v753_v17 }
  0x31   : > { %466 = vrot.lane.b32.xlu0 %v1906_v1, %s1849_s6  ;;  %v628_v19 = vld.sshfl [vmem:[#allocation1 + $0x8] sm:$0xff pattern:$0x75316420]  ;;  %v627_v20 = vld.sshfl [vmem:[#allocation1] sm:$0xff pattern:$0x75316420] }
  0x32   : > { %468 = vrot.lane.b32.xlu1 %v1897_v0, %s1849_s6  ;;  %470 = vrot.lane.b32.xlu2 %v1924_v4, %s1849_s6  ;;  %772 = vst [vmem:[#allocation1] ss:$2 sm:$0xff] %v1918_v3 }
  0x37   : > { %v777_v22 = vld.sshfl [vmem:[#allocation1 + $0x10] sm:$0xff pattern:$0x75316420] }
  0x38   : > { %922 = vst [vmem:[#allocation1 + $0x10] ss:$2 sm:$0xff] %v901_v21 }
  0x39   : > { %472 = vrot.lane.b32.xlu0 %v1941_v13, %s1849_s6  ;;  %v776_v23 = vld.sshfl [vmem:[#allocation1 + $0x8] sm:$0xff pattern:$0x75316420]  ;;  %v775_v24 = vld.sshfl [vmem:[#allocation1] sm:$0xff pattern:$0x75316420] }
  0x3a   : > { %486 = vrot.lane.b32.xlu1 %v481_v14, %s1848_s5  ;;  %632 = vrot.lane.b32.xlu2 %v628_v19, %s1850_s7  ;;  %920 = vst [vmem:[#allocation1] ss:$2 sm:$0xff] %v1918_v3 }
  0x3f   : > { %v925_v27 = vld.sshfl [vmem:[#allocation1 + $0x10] sm:$0xff pattern:$0x75316420] }
  0x40   : > { %1070 = vst [vmem:[#allocation1 + $0x10] ss:$2 sm:$0xff] %v1049_v28 }
  0x41   : > { %634 = vrot.lane.b32.xlu0 %v629_v18, %s1850_s7  ;;  %v923_v25 = vld.sshfl [vmem:[#allocation1] sm:$0xff pattern:$0x75316420]  ;;  %v924_v26 = vld.sshfl [vmem:[#allocation1 + $0x8] sm:$0xff pattern:$0x75316420] }
  0x42   : > { %614 = vrot.lane.b32.xlu1 %v1906_v1, %s1851_s8  ;;  %630 = vrot.lane.b32.xlu2 %v627_v20, %s1850_s7  ;;  %1068 = vst [vmem:[#allocation1] ss:$2 sm:$0xff] %v1918_v3 }
  0x47   : > { %v1073_v32 = vld.sshfl [vmem:[#allocation1 + $0x10] sm:$0xff pattern:$0x75316420] }
  0x48   : > { %1218 = vst [vmem:[#allocation1 + $0x10] ss:$2 sm:$0xff] %v1197_v33 }
  0x49   : > { %616 = vrot.lane.b32.xlu0 %v1897_v0, %s1851_s8  ;;  %v1071_v29 = vld.sshfl [vmem:[#allocation1] sm:$0xff pattern:$0x75316420]  ;;  %v1072_v30 = vld.sshfl [vmem:[#allocation1 + $0x8] sm:$0xff pattern:$0x75316420] }
  0x4a   : > { %618 = vrot.lane.b32.xlu1 %v1924_v4, %s1851_s8  ;;  %620 = vrot.lane.b32.xlu2 %v1941_v13, %s1851_s8  ;;  %1216 = vst [vmem:[#allocation1] ss:$2 sm:$0xff] %v1918_v3 }
  0x4f   : > { %v1221_v39 = vld.sshfl [vmem:[#allocation1 + $0x10] sm:$0xff pattern:$0x75316420] }
  0x50   : > { %1366 = vst [vmem:[#allocation1 + $0x10] ss:$2 sm:$0xff] %v1345_v37 }
  0x51   : > { %782 = vrot.lane.b32.xlu0 %v777_v22, %s1852_s9  ;;  %v1220_v35 = vld.sshfl [vmem:[#allocation1 + $0x8] sm:$0xff pattern:$0x75316420]  ;;  %v1219_v38 = vld.sshfl [vmem:[#allocation1] sm:$0xff pattern:$0x75316420] }
  0x52   : > { %762 = vrot.lane.b32.xlu1 %v1906_v1, %s1853_s10  ;;  %778 = vrot.lane.b32.xlu2 %v775_v24, %s1852_s9  ;;  %1364 = vst [vmem:[#allocation1] ss:$2 sm:$0xff] %v1918_v3 }
  0x57   : > { %v1369_v48 = vld.sshfl [vmem:[#allocation1 + $0x10] sm:$0xff pattern:$0x75316420] }
  0x59   : > { %780 = vrot.lane.b32.xlu0 %v776_v23, %s1852_s9  ;;  %v1368_v54 = vld.sshfl [vmem:[#allocation1 + $0x8] sm:$0xff pattern:$0x75316420]  ;;  %v1367_v58 = vld.sshfl [vmem:[#allocation1] sm:$0xff pattern:$0x75316420] }
  0x5a   : > { %764 = vrot.lane.b32.xlu1 %v1897_v0, %s1853_s10  ;;  %766 = vrot.lane.b32.xlu2 %v1924_v4, %s1853_s10 }
  0x61   : > { %768 = vrot.lane.b32.xlu0 %v1941_v13, %s1853_s10 }
  0x62   : > { %926 = vrot.lane.b32.xlu1 %v923_v25, %s1854_s11  ;;  %928 = vrot.lane.b32.xlu2 %v924_v26, %s1854_s11 }
  0x66   : > { %v1967_v31 = vpop.permute.xlu2 %221 }
  0x69   : > { %910 = vrot.lane.b32.xlu0 %v1906_v1, %s1854_s11 }
  0x6a   : > { %1074 = vrot.lane.b32.xlu1 %v1071_v29, %s1855_s12  ;;  %1076 = vrot.lane.b32.xlu2 %v1072_v30, %s1855_s12 }
  0x6e   : > { %v226_v34 = vpop.permute.xlu2 %225 }
  0x71   : > { %1058 = vrot.lane.b32.xlu0 %v1906_v1, %s1856_s13 }
  0x72   : > { %930 = vrot.lane.b32.xlu1 %v925_v27, %s1854_s11  ;;  %912 = vrot.lane.b32.xlu2 %v1897_v0, %s1854_s11 }
  0x79   : > { %1060 = vrot.lane.b32.xlu0 %v1897_v0, %s1856_s13 }
  0x7a   : > { %914 = vrot.lane.b32.xlu1 %v1924_v4, %s1854_s11  ;;  %1062 = vrot.lane.b32.xlu2 %v1924_v4, %s1856_s13 }
  0x7e   : > { %v224_v36 = vpop.permute.xlu1 %223 }
  0x81   : > { %916 = vrot.lane.b32.xlu0 %v1941_v13, %s1854_s11 }
  0x82   : > { %1064 = vrot.lane.b32.xlu1 %v1941_v13, %s1856_s13  ;;  %1078 = vrot.lane.b32.xlu2 %v1073_v32, %s1855_s12 }
  0x84   : > { %v1978_v40 = vpop.permute.xlu2 %484 }
  0x89   : > { %1224 = vrot.lane.b32.xlu0 %v1220_v35, %s1857_s14 }
  0x8a   : > { %v242_v41 = vpop.permute.xlu1 %241  ;;  %1226 = vrot.lane.b32.xlu1 %v1221_v39, %s1857_s14  ;;  %1206 = vrot.lane.b32.xlu2 %v1906_v1, %s1858_s17 }
  0x8b   : > { %v238_v42 = vpop.permute.xlu0 %237  ;;  %1813 = vmatpush.msk.msra.mxu2 %vm255_vm0, %v242_v41 }
  0x8c   : > { %1684 = vmatmul.msk.f32.vlgmr.msra.gmra.mxu2 %vm246_vm1, %v224_v36  ;;  %v1983_v43 = vpop.permute.xlu2 %470 }
  0x91   : > { %1222 = vrot.lane.b32.xlu0 %v1219_v38, %s1857_s14 }
  0x92   : > { %1208 = vrot.lane.b32.xlu1 %v1897_v0, %s1858_s17  ;;  %1210 = vrot.lane.b32.xlu2 %v1924_v4, %s1858_s17 }
  0x93   : > { %v240_v44 = vpop.permute.xlu0 %239 }
  0x94   : > { %v244_v45 = vsel %vm243_vm2, %v238_v42, %v240_v44  ;;  %v245_v46 = vsel %vm243_vm2, %v240_v44, %v242_v41  ;;  %1685 = vmatmul.msk.f32.gmra.mxu2 %vm246_vm1, %v226_v34  ;;  %v633_v47 = vpop.permute.xlu2 %632 }
  0x95   : > { %1672 = vmatpush.msk.msra.mxu0 %vm255_vm0, %v244_v45  ;;  %1811 = vmatpush.msk.msra.mxu3 %vm255_vm0, %v244_v45 }
  0x96   : > { %1812 = vmatpush.msk.msra.mxu1 %vm255_vm0, %v245_v46  ;;  %1673 = vmatmul.msk.f32.vlgmr.msra.gmra.mxu0 %vm246_vm1, %v1967_v31 }
  0x97   : > { %1674 = vmatmul.msk.f32.vlgmr.msra.gmra.mxu3 %vm246_vm1, %v224_v36  ;;  %1677 = vmatpush.msk.msrb.mxu0 %vm255_vm0, %v245_v46 }
  0x98   : > { %1679 = vmatmul.msk.f32.vlgmr.msra.gmra.mxu1 %vm246_vm1, %v224_v36  ;;  %1687 = vmatpush.msk.msrb.mxu3 %vm255_vm0, %v1932_v10 }
  0x99   : > { %1682 = vmatpush.msk.msra.mxu0 %vm255_vm0, %v242_v41  ;;  %1697 = vmatpush.msk.msrb.mxu1 %vm255_vm0, %v1930_v9 }
  0x9a   : > { %1374 = vrot.lane.b32.xlu1 %v1369_v48, %s1859_s18  ;;  %1212 = vrot.lane.b32.xlu0 %v1941_v13, %s1858_s17 }
  0x9b   : > { %v228_v49 = vpop.permute.xlu0 %227  ;;  %1354 = vrot.lane.b32.xlu2 %v1906_v1, %s1860_s19 }
  0x9c   : > { %v483_v50 = vpop.permute.xlu1 %482  ;;  %1686 = vmatmul.msk.f32.gmra.mxu2 %vm246_vm1, %v228_v49  ;;  %v631_v51 = vpop.permute.xlu2 %630 }
  0x9d   : > { %v489_v52 = vsel %vm488_vm3, %v483_v50, %v1978_v40  ;;  %v637_v53 = vsel %vm636_vm4, %v631_v51, %v633_v47 }
  0x9e   : > { %1702 = vmatpush.msk.msrb.mxu2 %vm255_vm0, %v489_v52  ;;  %1678 = vmatmul.msk.f32.vlgmr.msrb.gmra.mxu0 %vm246_vm1, %v1967_v31 }
  0x9f   : > { %1675 = vmatmul.msk.f32.gmra.mxu3 %vm246_vm1, %v226_v34  ;;  %1692 = vmatpush.msk.msrb.mxu0 %vm255_vm0, %v1934_v11 }
  0xa0   : > { %1680 = vmatmul.msk.f32.gmra.mxu1 %vm246_vm1, %v226_v34 }
  0xa1   : > { %1717 = vmatpush.msk.msra.mxu1 %vm255_vm0, %v637_v53 }
  0xa2   : > { %1372 = vrot.lane.b32.xlu1 %v1368_v54, %s1859_s18  ;;  %1370 = vrot.lane.b32.xlu0 %v1367_v58, %s1859_s18 }
  0xa3   : > { %v467_v55 = vpop.permute.xlu0 %466  ;;  %1356 = vrot.lane.b32.xlu2 %v1897_v0, %s1860_s19 }
  0xa4   : > { %v2018_v56 = vpop.permute.xlu1 %468  ;;  %1703 = vmatmul.msk.f32.vlgmr.msrb.gmra.mxu2 %vm246_vm1, %v467_v55  ;;  %v2021_v57 = vpop.permute.xlu2 %620 }
  0xa6   : > { %1683 = vmatmul.msk.f32.vlgmr.msra.gmra.mxu0 %vm246_vm1, %v1967_v31 }
  0xa7   : > { %1676 = vmatmul.msk.f32.gmra.mxu3 %vm246_vm1, %v228_v49 }
  0xa8   : > { %1681 = vmatmul.msk.f32.gmra.mxu1 %vm246_vm1, %v228_v49 }
  0xaa   : > { %1360 = vrot.lane.b32.xlu1 %v1941_v13, %s1860_s19  ;;  %1358 = vrot.lane.b32.xlu0 %v1924_v4, %s1860_s19 }
  0xab   : > { %v2029_v59 = vpop.permute.xlu0 %472 }
  0xac   : > { %v487_v60 = vpop.permute.xlu1 %486  ;;  %1704 = vmatmul.msk.f32.gmra.mxu2 %vm246_vm1, %v2018_v56  ;;  %v779_v62 = vpop.permute.xlu2 %778 }
  0xad   : > { %v490_v61 = vsel %vm488_vm3, %v1978_v40, %v487_v60  ;;  %1712 = vmatpush.msk.msra.mxu0 %vm255_vm0, %v487_v60 }
  0xae   : > { %1707 = vmatpush.msk.msra.mxu3 %vm255_vm0, %v490_v61  ;;  %1693 = vmatmul.msk.f32.vlgmr.msrb.gmra.mxu0 %vm246_vm1, %v1906_v1 }
  0xaf   : > { %1688 = vmatmul.msk.f32.vlgmr.msrb.gmra.mxu3 %vm246_vm1, %v1906_v1 }
  0xb0   : > { %1698 = vmatmul.msk.f32.vlgmr.msrb.gmra.mxu1 %vm246_vm1, %v1906_v1 }
  0xb3   : > { %v635_v63 = vpop.permute.xlu0 %634 }
  0xb4   : > { %v638_v2 = vsel %vm636_vm4, %v633_v47, %v635_v63  ;;  %1727 = vmatpush.msk.msrb.mxu3 %vm255_vm0, %v635_v63  ;;  %1705 = vmatmul.msk.f32.gmra.mxu2 %vm246_vm1, %v1983_v43  ;;  %v2049_v3 = vpop.permute.xlu1 %614  ;;  %v2058_v1 = vpop.permute.xlu2 %766 }
  0xb5   : > { %1722 = vmatpush.msk.msra.mxu2 %vm255_vm0, %v638_v2 }
  0xb6   : > { %1694 = vmatmul.msk.f32.gmra.mxu0 %vm246_vm1, %v1897_v0 }
  0xb7   : > { %1689 = vmatmul.msk.f32.gmra.mxu3 %vm246_vm1, %v1897_v0 }
  0xb8   : > { %1699 = vmatmul.msk.f32.gmra.mxu1 %vm246_vm1, %v1897_v0 }
  0xbb   : > { %v2060_v5 = vpop.permute.xlu0 %616 }
  0xbc   : > { %1706 = vmatmul.msk.f32.gmra.mxu2 %vm246_vm1, %v2029_v59  ;;  %v2064_v6 = vpop.permute.xlu1 %618  ;;  %v929_v7 = vpop.permute.xlu2 %928 }
  0xbe   : > { %1695 = vmatmul.msk.f32.gmra.mxu0 %vm246_vm1, %v1924_v4 }
  0xbf   : > { %1690 = vmatmul.msk.f32.gmra.mxu3 %vm246_vm1, %v1924_v4 }
  0xc0   : > { %1700 = vmatmul.msk.f32.gmra.mxu1 %vm246_vm1, %v1924_v4 }
  0xc3   : > { %v783_v0 = vpop.permute.xlu0 %782 }
  0xc4   : > { %1723 = vmatmul.msk.f32.vlgmr.msra.gmra.mxu2 %vm246_vm1, %v2049_v3  ;;  %v763_v8 = vpop.permute.xlu1 %762  ;;  %v1077_v12 = vpop.permute.xlu2 %1076 }
  0xc5   : > { %1742 = vmatpush.msk.msrb.mxu2 %vm255_vm0, %v783_v0 }
  0xc6   : > { %1696 = vmatmul.msk.f32.gmra.mxu0 %vm246_vm1, %v1941_v13 }
  0xc7   : > { %1691 = vmatmul.msk.f32.gmra.mxu3 %vm246_vm1, %v1941_v13 }
  0xc8   : > { %1701 = vmatmul.msk.f32.gmra.mxu1 %vm246_vm1, %v1941_v13 }
  0xcb   : > { %v781_v9 = vpop.permute.xlu0 %780 }
  0xcc   : > { %1724 = vmatmul.msk.f32.gmra.mxu2 %vm246_vm1, %v2060_v5  ;;  %v785_v4 = vsel %vm784_vm5, %v779_v62, %v781_v9  ;;  %v786_v10 = vsel %vm784_vm5, %v781_v9, %v783_v0  ;;  %v765_v11 = vpop.permute.xlu1 %764  ;;  %v2094_v16 = vpop.permute.xlu2 %912 }
  0xcd   : > { %1737 = vmatpush.msk.msrb.mxu1 %vm255_vm0, %v786_v10  ;;  %1732 = vmatpush.msk.msrb.mxu0 %vm255_vm0, %v785_v4 }
  0xce   : > { %1713 = vmatmul.msk.f32.vlgmr.msra.gmra.mxu0 %vm246_vm1, %v467_v55 }
  0xcf   : > { %1708 = vmatmul.msk.f32.vlgmr.msra.gmra.mxu3 %vm246_vm1, %v467_v55 }
  0xd0   : > { %1718 = vmatmul.msk.f32.vlgmr.msra.gmra.mxu1 %vm246_vm1, %v2049_v3 }
  0xd3   : > { %v769_v13 = vpop.permute.xlu0 %768 }
  0xd4   : > { %1725 = vmatmul.msk.f32.gmra.mxu2 %vm246_vm1, %v2064_v6  ;;  %v927_v14 = vpop.permute.xlu1 %926  ;;  %v2111_v20 = vpop.permute.xlu2 %1062 }
  0xd5   : > { %v933_v15 = vsel %vm932_vm6, %v927_v14, %v929_v7 }
  0xd6   : > { %1714 = vmatmul.msk.f32.gmra.mxu0 %vm246_vm1, %v2018_v56  ;;  %1747 = vmatpush.msk.msra.mxu3 %vm255_vm0, %v933_v15 }
  0xd7   : > { %1709 = vmatmul.msk.f32.gmra.mxu3 %vm246_vm1, %v2018_v56 }
  0xd8   : > { %1719 = vmatmul.msk.f32.gmra.mxu1 %vm246_vm1, %v2060_v5 }
  0xdb   : > { %v911_v17 = vpop.permute.xlu0 %910 }
  0xdc   : > { %1726 = vmatmul.msk.f32.gmra.mxu2 %vm246_vm1, %v2021_v57  ;;  %v1075_v18 = vpop.permute.xlu1 %1074  ;;  %v1079_v24 = vpop.permute.xlu2 %1078 }
  0xdd   : > { %v1081_v19 = vsel %vm1080_vm7, %v1075_v18, %v1077_v12  ;;  %v1082_v27 = vsel %vm1080_vm7, %v1077_v12, %v1079_v24 }
  0xde   : > { %1715 = vmatmul.msk.f32.gmra.mxu0 %vm246_vm1, %v1983_v43  ;;  %1762 = vmatpush.msk.msra.mxu2 %vm255_vm0, %v1081_v19 }
  0xdf   : > { %1710 = vmatmul.msk.f32.gmra.mxu3 %vm246_vm1, %v1983_v43 }
  0xe0   : > { %1720 = vmatmul.msk.f32.gmra.mxu1 %vm246_vm1, %v2064_v6 }
  0xe3   : > { %v2113_v21 = vpop.permute.xlu0 %1058 }
  0xe4   : > { %1743 = vmatmul.msk.f32.vlgmr.msrb.gmra.mxu2 %vm246_vm1, %v763_v8  ;;  %v931_v22 = vpop.permute.xlu1 %930  ;;  %v2184_v52 = vpop.permute.xlu2 %1206 }
  0xe5   : > { %v934_v23 = vsel %vm932_vm6, %v929_v7, %v931_v22  ;;  %1757 = vmatpush.msk.msra.mxu1 %vm255_vm0, %v931_v22 }
  0xe6   : > { %1716 = vmatmul.msk.f32.gmra.mxu0 %vm246_vm1, %v2029_v59 }
  0xe7   : > { %1711 = vmatmul.msk.f32.gmra.mxu3 %vm246_vm1, %v2029_v59  ;;  %1752 = vmatpush.msk.msra.mxu0 %vm255_vm0, %v934_v23 }
  0xe8   : > { %1721 = vmatmul.msk.f32.gmra.mxu1 %vm246_vm1, %v2021_v57 }
  0xeb   : > { %v2125_v25 = vpop.permute.xlu0 %1060 }
  0xec   : > { %1744 = vmatmul.msk.f32.gmra.mxu2 %vm246_vm1, %v765_v11  ;;  %v915_v26 = vpop.permute.xlu1 %914  ;;  %v2199_v2 = vpop.permute.xlu2 %1210 }
  0xee   : > { %1733 = vmatmul.msk.f32.vlgmr.msrb.gmra.mxu0 %vm246_vm1, %v763_v8 }
  0xef   : > { %1728 = vmatmul.msk.f32.vlgmr.msrb.gmra.mxu3 %vm246_vm1, %v2049_v3  ;;  %1772 = vmatpush.msk.msrb.mxu0 %vm255_vm0, %v1079_v24 }
  0xf0   : > { %1738 = vmatmul.msk.f32.vlgmr.msrb.gmra.mxu1 %vm246_vm1, %v763_v8  ;;  %1767 = vmatpush.msk.msrb.mxu3 %vm255_vm0, %v1082_v27 }
  0xf3   : > { %v917_v28 = vpop.permute.xlu0 %916 }
  0xf4   : > { %1745 = vmatmul.msk.f32.gmra.mxu2 %vm246_vm1, %v2058_v1  ;;  %v2137_v29 = vpop.permute.xlu1 %1064 }
  0xf5   : > { %v1355_v14 = vpop.permute.xlu2 %1354 }
  0xf6   : > { %1734 = vmatmul.msk.f32.gmra.mxu0 %vm246_vm1, %v765_v11 }
  0xf7   : > { %1729 = vmatmul.msk.f32.gmra.mxu3 %vm246_vm1, %v2060_v5 }
  0xf8   : > { %1739 = vmatmul.msk.f32.gmra.mxu1 %vm246_vm1, %v765_v11 }
  0xfb   : > { %v1225_v30 = vpop.permute.xlu0 %1224 }
  0xfc   : > { %1746 = vmatmul.msk.f32.gmra.mxu2 %vm246_vm1, %v769_v13  ;;  %v1227_v31 = vpop.permute.xlu1 %1226 }
  0xfd   : > { %v1230_v32 = vsel %vm1228_vm8, %v1225_v30, %v1227_v31 }
  0xfe   : > { %1735 = vmatmul.msk.f32.gmra.mxu0 %vm246_vm1, %v2058_v1  ;;  %1782 = vmatpush.msk.msrb.mxu2 %vm255_vm0, %v1230_v32 }
  0xff   : > { %1730 = vmatmul.msk.f32.gmra.mxu3 %vm246_vm1, %v2064_v6 }
 0x100   : > { %1740 = vmatmul.msk.f32.gmra.mxu1 %vm246_vm1, %v2058_v1 }
 0x103   : > { %v1223_v33 = vpop.permute.xlu0 %1222 }
 0x104   : > { %1763 = vmatmul.msk.f32.vlgmr.msra.gmra.mxu2 %vm246_vm1, %v2113_v21  ;;  %v1229_v34 = vsel %vm1228_vm8, %v1223_v33, %v1225_v30  ;;  %v2153_v35 = vpop.permute.xlu1 %1208 }
 0x105   : > { %1777 = vmatpush.msk.msrb.mxu1 %vm255_vm0, %v1229_v34 }
 0x106   : > { %1736 = vmatmul.msk.f32.gmra.mxu0 %vm246_vm1, %v769_v13 }
 0x107   : > { %1731 = vmatmul.msk.f32.gmra.mxu3 %vm246_vm1, %v2021_v57 }
 0x108   : > { %1741 = vmatmul.msk.f32.gmra.mxu1 %vm246_vm1, %v769_v13 }
 0x10c   : > { %1764 = vmatmul.msk.f32.gmra.mxu2 %vm246_vm1, %v2125_v25  ;;  %v1375_v36 = vpop.permute.xlu1 %1374  ;;  %v2167_v38 = vpop.permute.xlu0 %1212 }
 0x10d   : > { %1802 = vmatpush.msk.msra.mxu2 %vm255_vm0, %v1375_v36 }
 0x10e   : > { %1753 = vmatmul.msk.f32.vlgmr.msra.gmra.mxu0 %vm246_vm1, %v911_v17 }
 0x10f   : > { %1748 = vmatmul.msk.f32.vlgmr.msra.gmra.mxu3 %vm246_vm1, %v911_v17  ;;  %v340_v37 = vpop.f32.mrf.mxu2 }
 0x110   : > { %1758 = vmatmul.msk.f32.vlgmr.msra.gmra.mxu1 %vm246_vm1, %v911_v17  ;;  %1787 = vmatpush.msk.msra.mxu3 %vm255_vm0, %v1227_v31 }
 0x113   : > { %v279_v39 = vpop.f32.mrf.mxu0 }
 0x114   : > { %1765 = vmatmul.msk.f32.gmra.mxu2 %vm246_vm1, %v2111_v20  ;;  %v1373_v40 = vpop.permute.xlu1 %1372  ;;  %v1371_v46 = vpop.permute.xlu0 %1370 }
 0x115   : > { %v311_v41 = vpop.f32.mrf.mxu1  ;;  %v1378_v42 = vsel %vm1376_vm9, %v1373_v40, %v1375_v36  ;;  %v1377_v47 = vsel %vm1376_vm9, %v1371_v46, %v1373_v40 }
 0x116   : > { %1754 = vmatmul.msk.f32.gmra.mxu0 %vm246_vm1, %v2094_v16  ;;  %1797 = vmatpush.msk.msra.mxu1 %vm255_vm0, %v1378_v42 }
 0x117   : > { %1749 = vmatmul.msk.f32.gmra.mxu3 %vm246_vm1, %v2094_v16  ;;  %v343_v43 = vpop.f32.mrf.mxu2  ;;  %1792 = vmatpush.msk.msra.mxu0 %vm255_vm0, %v1377_v47 }
 0x118   : > { %1759 = vmatmul.msk.f32.gmra.mxu1 %vm246_vm1, %v2094_v16 }
 0x11a   : > { %v282_v44 = vpop.f32.mrf.mxu3 }
 0x11b   : > { %v308_v45 = vpop.f32.mrf.mxu0 }
 0x11c   : > { %1766 = vmatmul.msk.f32.gmra.mxu2 %vm246_vm1, %v2137_v29  ;;  %v1359_v36 = vpop.permute.xlu0 %1358  ;;  %v1361_v46 = vpop.permute.xlu1 %1360 }
 0x11d   : > { %v314_v48 = vpop.f32.mrf.mxu1 }
 0x11e   : > { %1755 = vmatmul.msk.f32.gmra.mxu0 %vm246_vm1, %v915_v26 }
 0x11f   : > { %1750 = vmatmul.msk.f32.gmra.mxu3 %vm246_vm1, %v915_v26  ;;  %v346_v49 = vpop.f32.mrf.mxu2 }
 0x120   : > { %1760 = vmatmul.msk.f32.gmra.mxu1 %vm246_vm1, %v915_v26  ;;  %v1357_v26 = vpop.permute.xlu2 %1356 }
 0x122   : > { %v285_v50 = vpop.f32.mrf.mxu3 }
 0x123   : > { %v337_v51 = vpop.f32.mrf.mxu0 }
 0x124   : > { %1783 = vmatmul.msk.f32.vlgmr.msrb.gmra.mxu2 %vm246_vm1, %v2184_v52 }
 0x125   : > { %v317_v53 = vpop.f32.mrf.mxu1 }
 0x126   : > { %1756 = vmatmul.msk.f32.gmra.mxu0 %vm246_vm1, %v917_v28 }
 0x127   : > { %1751 = vmatmul.msk.f32.gmra.mxu3 %vm246_vm1, %v917_v28  ;;  %v522_v54 = vpop.f32.mrf.mxu2 }
 0x128   : > { %1761 = vmatmul.msk.f32.gmra.mxu1 %vm246_vm1, %v917_v28 }
 0x12a   : > { %v288_v55 = vpop.f32.mrf.mxu3 }
 0x12b   : > { %v415_v56 = vpop.f32.mrf.mxu0 }
 0x12c   : > { %v416_v57 = vadd.f32 %v415_v56, %v308_v45  ;;  %1784 = vmatmul.msk.f32.gmra.mxu2 %vm246_vm1, %v2153_v35 }
 0x12d   : > { %v444_v58 = vpop.f32.mrf.mxu1 }
 0x12e   : > { %v445_v59 = vadd.f32 %v444_v58, %v337_v51  ;;  %1773 = vmatmul.msk.f32.vlgmr.msrb.gmra.mxu0 %vm246_vm1, %v2113_v21 }
 0x12f   : > { %1768 = vmatmul.msk.f32.vlgmr.msrb.gmra.mxu3 %vm246_vm1, %v2113_v21  ;;  %v525_v60 = vpop.f32.mrf.mxu2 }
 0x130   : > { %1778 = vmatmul.msk.f32.vlgmr.msrb.gmra.mxu1 %vm246_vm1, %v2184_v52 }
 0x132   : > { %v386_v61 = vpop.f32.mrf.mxu3 }
 0x133   : > { %v387_v62 = vadd.f32 %v386_v61, %v279_v39  ;;  %v418_v63 = vpop.f32.mrf.mxu0 }
 0x134   : > { %v419_v3 = vadd.f32 %v418_v63, %v311_v41  ;;  %1785 = vmatmul.msk.f32.gmra.mxu2 %vm246_vm1, %v2199_v2 }
 0x135   : > { %v447_v1 = vpop.f32.mrf.mxu1  ;;  %v592_v5 = vadd.f32 %v522_v54, %v387_v62 }
 0x136   : > { %v448_v6 = vadd.f32 %v447_v1, %v340_v37  ;;  %1774 = vmatmul.msk.f32.gmra.mxu0 %vm246_vm1, %v2125_v25 }
 0x137   : > { %1769 = vmatmul.msk.f32.gmra.mxu3 %vm246_vm1, %v2125_v25  ;;  %v528_v7 = vpop.f32.mrf.mxu2 }
 0x138   : > { %1779 = vmatmul.msk.f32.gmra.mxu1 %vm246_vm1, %v2153_v35 }
 0x13a   : > { %v389_v0 = vpop.f32.mrf.mxu3 }
 0x13b   : > { %v390_v8 = vadd.f32 %v389_v0, %v282_v44  ;;  %v421_v9 = vpop.f32.mrf.mxu0 }
 0x13c   : > { %v422_v4 = vadd.f32 %v421_v9, %v314_v48  ;;  %1786 = vmatmul.msk.f32.gmra.mxu2 %vm246_vm1, %v2167_v38 }
 0x13d   : > { %v450_v10 = vpop.f32.mrf.mxu1  ;;  %v595_v11 = vadd.f32 %v525_v60, %v390_v8 }
 0x13e   : > { %v451_v12 = vadd.f32 %v450_v10, %v343_v43  ;;  %1775 = vmatmul.msk.f32.gmra.mxu0 %vm246_vm1, %v2111_v20 }
 0x13f   : > { %1770 = vmatmul.msk.f32.gmra.mxu3 %vm246_vm1, %v2111_v20  ;;  %v531_v13 = vpop.f32.mrf.mxu2 }
 0x140   : > { %1780 = vmatmul.msk.f32.gmra.mxu1 %vm246_vm1, %v2199_v2 }
 0x142   : > { %v392_v15 = vpop.f32.mrf.mxu3 }
 0x143   : > { %v393_v16 = vadd.f32 %v392_v15, %v285_v50  ;;  %v424_v17 = vpop.f32.mrf.mxu0 }
 0x144   : > { %v425_v18 = vadd.f32 %v424_v17, %v317_v53  ;;  %1803 = vmatmul.msk.f32.vlgmr.msra.gmra.mxu2 %vm246_vm1, %v1355_v14 }
 0x145   : > { %v453_v19 = vpop.f32.mrf.mxu1  ;;  %v598_v21 = vadd.f32 %v528_v7, %v393_v16 }
 0x146   : > { %v454_v22 = vadd.f32 %v453_v19, %v346_v49  ;;  %1776 = vmatmul.msk.f32.gmra.mxu0 %vm246_vm1, %v2137_v29 }
 0x147   : > { %1771 = vmatmul.msk.f32.gmra.mxu3 %vm246_vm1, %v2137_v29  ;;  %v699_v20 = vpop.f32.mrf.mxu2 }
 0x148   : > { %1781 = vmatmul.msk.f32.gmra.mxu1 %vm246_vm1, %v2167_v38 }
 0x14a   : > { %v395_v23 = vpop.f32.mrf.mxu3 }
 0x14b   : > { %v396_v24 = vadd.f32 %v395_v23, %v288_v55  ;;  %v580_v25 = vpop.f32.mrf.mxu0 }
 0x14c   : > { %v594_v27 = vadd.f32 %v580_v25, %v445_v59  ;;  %1804 = vmatmul.msk.f32.gmra.mxu2 %vm246_vm1, %v1357_v26 }
 0x14d   : > { %v670_v28 = vpop.f32.mrf.mxu1  ;;  %v601_v30 = vadd.f32 %v531_v13, %v396_v24 }
 0x14e   : > { %v740_v31 = vadd.f32 %v670_v28, %v592_v5  ;;  %1793 = vmatmul.msk.f32.vlgmr.msra.gmra.mxu0 %vm246_vm1, %v1355_v14 }
 0x14f   : > { %1788 = vmatmul.msk.f32.vlgmr.msra.gmra.mxu3 %vm246_vm1, %v2184_v52  ;;  %v702_v29 = vpop.f32.mrf.mxu2 }
 0x150   : > { %1798 = vmatmul.msk.f32.vlgmr.msra.gmra.mxu1 %vm246_vm1, %v1355_v14 }
 0x152   : > { %v551_v32 = vpop.f32.mrf.mxu3 }
 0x153   : > { %v593_v33 = vadd.f32 %v551_v32, %v416_v57  ;;  %v583_v34 = vpop.f32.mrf.mxu0 }
 0x154   : > { %v597_v37 = vadd.f32 %v583_v34, %v448_v6  ;;  %1805 = vmatmul.msk.f32.gmra.mxu2 %vm246_vm1, %v1359_v36 }
 0x155   : > { %v673_v39 = vpop.f32.mrf.mxu1  ;;  %v741_v40 = vadd.f32 %v699_v20, %v593_v33 }
 0x156   : > { %v743_v41 = vadd.f32 %v673_v39, %v595_v11  ;;  %1794 = vmatmul.msk.f32.gmra.mxu0 %vm246_vm1, %v1357_v26 }
 0x157   : > { %1789 = vmatmul.msk.f32.gmra.mxu3 %vm246_vm1, %v2153_v35  ;;  %v705_v42 = vpop.f32.mrf.mxu2 }
 0x158   : > { %1799 = vmatmul.msk.f32.gmra.mxu1 %vm246_vm1, %v1357_v26 }
 0x15a   : > { %v554_v43 = vpop.f32.mrf.mxu3 }
 0x15b   : > { %v596_v44 = vadd.f32 %v554_v43, %v419_v3  ;;  %v586_v45 = vpop.f32.mrf.mxu0 }
 0x15c   : > { %v600_v47 = vadd.f32 %v586_v45, %v451_v12  ;;  %1806 = vmatmul.msk.f32.gmra.mxu2 %vm246_vm1, %v1361_v46 }
 0x15d   : > { %v676_v48 = vpop.f32.mrf.mxu1  ;;  %v744_v49 = vadd.f32 %v702_v29, %v596_v44 }
 0x15e   : > { %v746_v50 = vadd.f32 %v676_v48, %v598_v21  ;;  %1795 = vmatmul.msk.f32.gmra.mxu0 %vm246_vm1, %v1359_v36 }
 0x15f   : > { %1790 = vmatmul.msk.f32.gmra.mxu3 %vm246_vm1, %v2199_v2  ;;  %v708_v51 = vpop.f32.mrf.mxu2 }
 0x160   : > { %1800 = vmatmul.msk.f32.gmra.mxu1 %vm246_vm1, %v1359_v36 }
 0x162   : > { %v557_v35 = vpop.f32.mrf.mxu3 }
 0x163   : > { %v599_v52 = vadd.f32 %v557_v35, %v422_v4  ;;  %v589_v53 = vpop.f32.mrf.mxu0 }
 0x164   : > { %v603_v54 = vadd.f32 %v589_v53, %v454_v22 }
 0x165   : > { %v679_v55 = vpop.f32.mrf.mxu1  ;;  %v747_v56 = vadd.f32 %v705_v42, %v599_v52 }
 0x166   : > { %v749_v57 = vadd.f32 %v679_v55, %v601_v30  ;;  %1796 = vmatmul.msk.f32.gmra.mxu0 %vm246_vm1, %v1361_v46 }
 0x167   : > { %1791 = vmatmul.msk.f32.gmra.mxu3 %vm246_vm1, %v2167_v38  ;;  %v876_v58 = vpop.f32.mrf.mxu2 }
 0x168   : > { %1801 = vmatmul.msk.f32.gmra.mxu1 %vm246_vm1, %v1361_v46 }
 0x16a   : > { %v560_v59 = vpop.f32.mrf.mxu3 }
 0x16b   : > { %v602_v60 = vadd.f32 %v560_v59, %v425_v18  ;;  %v818_v61 = vpop.f32.mrf.mxu0 }
 0x16c   : > { %v888_v62 = vadd.f32 %v818_v61, %v740_v31 }
 0x16d   : > { %v847_v63 = vpop.f32.mrf.mxu1  ;;  %v750_v2 = vadd.f32 %v708_v51, %v602_v60 }
 0x16e   : > { %v889_v3 = vadd.f32 %v847_v63, %v741_v40  ;;  %v1492_v63 = vld [vmem:[%s2361_s2] sm:$0x7] }
 0x16f   : > { %v879_v1 = vpop.f32.mrf.mxu2 }
 0x172   : > { %v728_v5 = vpop.f32.mrf.mxu3 }
 0x173   : > { %v742_v6 = vadd.f32 %v728_v5, %v594_v27  ;;  %v821_v7 = vpop.f32.mrf.mxu0 }
 0x174   : > { %v2243_v0 = vadd.f32 %v821_v7, %v743_v41  ;;  %v2292_v7 = vperm.slane %v1492_v63, 0 }
 0x175   : > { %v850_v8 = vpop.f32.mrf.mxu1  ;;  %v2245_v9 = vadd.f32 %v876_v58, %v742_v6 }
 0x176   : > { %v2247_v38 = vadd.f32 %v850_v8, %v744_v49 }
 0x177   : > { %v882_v4 = vpop.f32.mrf.mxu2 }
 0x17a   : > { %v731_v10 = vpop.f32.mrf.mxu3 }
 0x17b   : > { %v745_v11 = vadd.f32 %v731_v10, %v597_v37  ;;  %v824_v12 = vpop.f32.mrf.mxu0 }
 0x17c   : > { %v2249_v13 = vadd.f32 %v824_v12, %v746_v50 }
 0x17d   : > { %v853_v14 = vpop.f32.mrf.mxu1  ;;  %v2251_v15 = vadd.f32 %v879_v1, %v745_v11 }
 0x17e   : > { %v2253_v16 = vadd.f32 %v853_v14, %v747_v56 }
 0x17f   : > { %v885_v17 = vpop.f32.mrf.mxu2 }
 0x182   : > { %v734_v18 = vpop.f32.mrf.mxu3 }
 0x183   : > { %v748_v19 = vadd.f32 %v734_v18, %v600_v47  ;;  %v827_v21 = vpop.f32.mrf.mxu0 }
 0x184   : > { %v2255_v22 = vadd.f32 %v827_v21, %v749_v57 }
 0x185   : > { %v856_v20 = vpop.f32.mrf.mxu1  ;;  %v2257_v23 = vadd.f32 %v882_v4, %v748_v19 }
 0x186   : > { %v2259_v24 = vadd.f32 %v856_v20, %v750_v2 }
 0x187   : > { %v1114_v25 = vpop.f32.mrf.mxu2 }
 0x18a   : > { %v737_v26 = vpop.f32.mrf.mxu3 }
 0x18b   : > { %v751_v27 = vadd.f32 %v737_v26, %v603_v54  ;;  %v995_v28 = vpop.f32.mrf.mxu0 }
 0x18c   : > { %v1037_v61 = vadd.f32 %v995_v28, %v889_v3 }
 0x18d   : > { %v1024_v30 = vpop.f32.mrf.mxu1  ;;  %v2261_v31 = vadd.f32 %v885_v17, %v751_v27 }
 0x18e   : > { %v1038_v19 = vadd.f32 %v1024_v30, %v2245_v9 }
 0x18f   : > { %v1117_v29 = vpop.f32.mrf.mxu2 }
 0x192   : > { %v966_v32 = vpop.f32.mrf.mxu3 }
 0x193   : > { %v998_v33 = vpop.f32.mrf.mxu0  ;;  %v1036_v59 = vadd.f32 %v966_v32, %v888_v62  ;;  %v2295_v62 = vperm.slane %v1492_v63, 1 }
 0x194   : > { %v1040_v14 = vadd.f32 %v998_v33, %v2247_v38 }
 0x195   : > { %v2263_v34 = vpop.f32.mrf.mxu1  ;;  %v1184_v2 = vadd.f32 %v1114_v25, %v1036_v59 }
 0x197   : > { %v2265_v36 = vpop.f32.mrf.mxu2 }
 0x19a   : > { %v969_v37 = vpop.f32.mrf.mxu3 }
 0x19b   : > { %v1001_v39 = vpop.f32.mrf.mxu0  ;;  %v1039_v4 = vadd.f32 %v969_v37, %v2243_v0 }
 0x19d   : > { %v2267_v40 = vpop.f32.mrf.mxu1  ;;  %v1187_v21 = vadd.f32 %v1117_v29, %v1039_v4  ;;  %v1043_v29 = vadd.f32 %v1001_v39, %v2253_v16 }
 0x19f   : > { %v2269_v41 = vpop.f32.mrf.mxu2 }
 0x1a2   : > { %v972_v42 = vpop.f32.mrf.mxu3 }
 0x1a3   : > { %v2271_v43 = vpop.f32.mrf.mxu0  ;;  %v1042_v38 = vadd.f32 %v972_v42, %v2249_v13 }
 0x1a5   : > { %v2273_v44 = vpop.f32.mrf.mxu1 }
 0x1a7   : > { %v1291_v45 = vpop.f32.mrf.mxu2 }
 0x1aa   : > { %v2275_v46 = vpop.f32.mrf.mxu3 }
 0x1ab   : > { %v1172_v47 = vpop.f32.mrf.mxu0 }
 0x1ac   : > { %v1186_v27 = vadd.f32 %v1172_v47, %v1038_v19 }
 0x1ad   : > { %v1262_v48 = vpop.f32.mrf.mxu1 }
 0x1ae   : > { %v1332_v5 = vadd.f32 %v1262_v48, %v1184_v2  ;;  %v1041_v2 = vadd.f32 %v2263_v34, %v2251_v15  ;;  %v1045_v15 = vadd.f32 %v2275_v46, %v2255_v22  ;;  %v1044_v22 = vadd.f32 %v2267_v40, %v2257_v23 }
 0x1af   : > { %v1294_v49 = vpop.f32.mrf.mxu2 }
 0x1b2   : > { %v1143_v50 = vpop.f32.mrf.mxu3 }
 0x1b3   : > { %v1175_v51 = vpop.f32.mrf.mxu0  ;;  %v1185_v1 = vadd.f32 %v1143_v50, %v1037_v61  ;;  %v2301_v50 = vperm.slane %v1492_v63, 2 }
 0x1b5   : > { %v1265_v35 = vpop.f32.mrf.mxu1  ;;  %v1333_v11 = vadd.f32 %v1291_v45, %v1185_v1  ;;  %v1190_v1 = vadd.f32 %v2265_v36, %v1042_v38 }
 0x1b6   : > { %v1335_v0 = vadd.f32 %v1265_v35, %v1187_v21 }
 0x1b7   : > { %v2277_v52 = vpop.f32.mrf.mxu2 }
 0x1ba   : > { %v1146_v53 = vpop.f32.mrf.mxu3 }
 0x1bb   : > { %v2279_v54 = vpop.f32.mrf.mxu0  ;;  %v1188_v20 = vadd.f32 %v1146_v53, %v1040_v14 }
 0x1bd   : > { %v1268_v55 = vpop.f32.mrf.mxu1  ;;  %v1336_v59 = vadd.f32 %v1294_v49, %v1188_v20 }
 0x1be   : > { %v1338_v39 = vadd.f32 %v1268_v55, %v1190_v1  ;;  %v1046_v55 = vadd.f32 %v2271_v43, %v2259_v24  ;;  %v1192_v24 = vadd.f32 %v2279_v54, %v1044_v22 }
 0x1bf   : > { %v2281_v56 = vpop.f32.mrf.mxu2 }
 0x1c2   : > { %v1149_v57 = vpop.f32.mrf.mxu3 }
 0x1c3   : > { %v2283_v58 = vpop.f32.mrf.mxu0  ;;  %v1191_v13 = vadd.f32 %v1149_v57, %v1043_v29  ;;  %v1047_v29 = vadd.f32 %v2273_v44, %v2261_v31 }
 0x1c5   : > { %v2285_v60 = vpop.f32.mrf.mxu1  ;;  %v1339_v14 = vadd.f32 %v2277_v52, %v1191_v13  ;;  %v1193_v52 = vadd.f32 %v2269_v41, %v1045_v15 }
 0x1c7   : > { %v1468_v12 = vpop.f32.mrf.mxu2 }
 0x1ca   : > { %v2290_v6 = vpop.f32.mrf.mxu3 }
 0x1cb   : > { %v1410_v8 = vpop.f32.mrf.mxu0  ;;  %v1194_v46 = vadd.f32 %v2290_v6, %v1046_v55 }
 0x1cc   : > { %v1480_v10 = vadd.f32 %v1410_v8, %v1332_v5  ;;  %v1189_v5 = vadd.f32 %v1175_v51, %v1041_v2 }
 0x1cd   : > { %v1439_v3 = vpop.f32.mrf.mxu1  ;;  %v1342_v38 = vadd.f32 %v2281_v56, %v1194_v46 }
 0x1ce   : > { %v1500_v17 = vmul.f32 %v2292_v7, %v1480_v10  ;;  %v1481_v18 = vadd.f32 %v1439_v3, %v1333_v11 }
 0x1cf   : > { %v1471_v35 = vpop.f32.mrf.mxu2 }
 0x1d0   : > { %v1538_v25 = vmul.f32 %v1500_v17, %v1480_v10  ;;  %v1501_v26 = vmul.f32 %v2295_v62, %v1481_v18 }
 0x1d2   : > { %v1539_v28 = vmul.f32 %v1501_v26, %v1481_v18  ;;  %v1320_v32 = vpop.f32.mrf.mxu3  ;;  %v1512_v37 = vadd.f32 %v1501_v26, %v1500_v17 }
 0x1d3   : > { %v1334_v45 = vadd.f32 %v1320_v32, %v1186_v27  ;;  %v1413_v48 = vpop.f32.mrf.mxu0  ;;  %v1341_v32 = vadd.f32 %v2285_v60, %v1193_v52 }
 0x1d4   : > { %v1483_v33 = vadd.f32 %v1413_v48, %v1335_v0  ;;  %v1550_v61 = vadd.f32 %v1539_v28, %v1538_v25 }
 0x1d5   : > { %v1442_v9 = vpop.f32.mrf.mxu1  ;;  %v1482_v30 = vadd.f32 %v1468_v12, %v1334_v45 }
 0x1d6   : > { %v1503_v53 = vmul.f32 %v2292_v7, %v1483_v33  ;;  %v1484_v47 = vadd.f32 %v1442_v9, %v1336_v59 }
 0x1d7   : > { %v1502_v63 = vmul.f32 %v2301_v50, %v1482_v30  ;;  %v1474_v0 = vpop.f32.mrf.mxu2 }
 0x1d8   : > { %v1541_v42 = vmul.f32 %v1503_v53, %v1483_v33  ;;  %v1504_v49 = vmul.f32 %v2295_v62, %v1484_v47 }
 0x1d9   : > { %v1540_v8 = vmul.f32 %v1502_v63, %v1482_v30  ;;  %v1514_v16 = vsel %vm1513_vm10, %v1502_v63, 0.0 }
 0x1da   : > { %v1542_v4 = vmul.f32 %v1504_v49, %v1484_v47  ;;  %v1323_v10 = vpop.f32.mrf.mxu3  ;;  %v1515_v11 = vadd.f32 %v1514_v16, %v1512_v37  ;;  %v1518_v12 = vadd.f32 %v1504_v49, %v1503_v53 }
 0x1db   : > { %v1337_v34 = vadd.f32 %v1323_v10, %v1189_v5  ;;  %v1416_v3 = vpop.f32.mrf.mxu0  ;;  %v1551_v36 = vsel %vm1513_vm10, %v1540_v8, 0.0 }
 0x1dc   : > { %v1486_v57 = vadd.f32 %v1416_v3, %v1338_v39  ;;  %1516 = vadd.xlane.f32.xlu2 %v1515_v11  ;;  %v1552_v51 = vadd.f32 %v1551_v36, %v1550_v61  ;;  %v1555_v17 = vadd.f32 %v1542_v4, %v1541_v42 }
 0x1dd   : > { %v1445_v18 = vpop.f32.mrf.mxu1  ;;  %v1485_v19 = vadd.f32 %v1471_v35, %v1337_v34  ;;  %v1195_v35 = vadd.f32 %v2283_v58, %v1047_v29 }
 0x1de   : > { %v1506_v21 = vmul.f32 %v2292_v7, %v1486_v57  ;;  %v1487_v20 = vadd.f32 %v1445_v18, %v1339_v14 }
 0x1df   : > { %v1505_v25 = vmul.f32 %v2301_v50, %v1485_v19  ;;  %v1477_v42 = vpop.f32.mrf.mxu2 }
 0x1e0   : > { %v1544_v26 = vmul.f32 %v1506_v21, %v1486_v57  ;;  %v1507_v27 = vmul.f32 %v2295_v62, %v1487_v20 }
 0x1e1   : > { %v1543_v43 = vmul.f32 %v1505_v25, %v1485_v19  ;;  %v1519_v28 = vsel %vm1513_vm10, %v1505_v25, 0.0 }
 0x1e2   : > { %v1545_v37 = vmul.f32 %v1507_v27, %v1487_v20  ;;  %v1326_v45 = vpop.f32.mrf.mxu3  ;;  %v1520_v23 = vadd.f32 %v1519_v28, %v1518_v12  ;;  %v1523_v40 = vadd.f32 %v1507_v27, %v1506_v21 }
 0x1e3   : > { %v1340_v6 = vadd.f32 %v1326_v45, %v1192_v24  ;;  %v1419_v48 = vpop.f32.mrf.mxu0  ;;  %v1556_v41 = vsel %vm1513_vm10, %v1543_v43, 0.0 }
 0x1e4   : > { %v1489_v33 = vadd.f32 %v1419_v48, %v1341_v32  ;;  %1521 = vadd.xlane.f32.xlu0 %v1520_v23  ;;  %1553 = vadd.xlane.f32.xlu2 %v1552_v51  ;;  %v1557_v59 = vadd.f32 %v1556_v41, %v1555_v17  ;;  %v1560_v54 = vadd.f32 %v1545_v37, %v1544_v26 }
 0x1e5   : > { %v1448_v61 = vpop.f32.mrf.mxu1  ;;  %v1488_v9 = vadd.f32 %v1474_v0, %v1340_v6 }
 0x1e6   : > { %v1509_v30 = vmul.f32 %v2292_v7, %v1489_v33  ;;  %v1490_v60 = vadd.f32 %v1448_v61, %v1342_v38 }
 0x1e7   : > { %v1508_v53 = vmul.f32 %v2301_v50, %v1488_v9 }
 0x1e8   : > { %v1547_v47 = vmul.f32 %v1509_v30, %v1489_v33  ;;  %v1510_v56 = vmul.f32 %v2295_v62, %v1490_v60 }
 0x1e9   : > { %v1546_v2 = vmul.f32 %v1508_v53, %v1488_v9  ;;  %v1524_v63 = vsel %vm1513_vm10, %v1508_v53, 0.0 }
 0x1ea   : > { %v1548_v1 = vmul.f32 %v1510_v56, %v1490_v60  ;;  %v1329_v13 = vpop.f32.mrf.mxu3  ;;  %v1525_v49 = vadd.f32 %v1524_v63, %v1523_v40  ;;  %v1528_v5 = vadd.f32 %v1510_v56, %v1509_v30 }
 0x1eb   : > { %v1343_v7 = vadd.f32 %v1329_v13, %v1195_v35  ;;  %v1561_v8 = vsel %vm1513_vm10, %v1546_v2, 0.0 }
 0x1ec   : > { %1526 = vadd.xlane.f32.xlu1 %v1525_v49  ;;  %1558 = vadd.xlane.f32.xlu0 %v1557_v59  ;;  %v1562_v31 = vadd.f32 %v1561_v8, %v1560_v54  ;;  %v1565_v44 = vadd.f32 %v1548_v1, %v1547_v47 }
 0x1ed   : > { %v1491_v16 = vadd.f32 %v1477_v42, %v1343_v7 }
 0x1ef   : > { %v1511_v62 = vmul.f32 %v2301_v50, %v1491_v16 }
 0x1f1   : > { %v1549_v58 = vmul.f32 %v1511_v62, %v1491_v16  ;;  %v1529_v39 = vsel %vm1513_vm10, %v1511_v62, 0.0 }
 0x1f2   : > { %v1530_v4 = vadd.f32 %v1529_v39, %v1528_v5 }
 0x1f3   : > { %v1566_v10 = vsel %vm1513_vm10, %v1549_v58, 0.0 }
 0x1f4   : > { %1563 = vadd.xlane.f32.xlu1 %v1562_v31  ;;  %1531 = vadd.xlane.f32.xlu2 %v1530_v4  ;;  %v1567_v11 = vadd.f32 %v1566_v10, %v1565_v44 }
 0x1fc   : > { %1568 = vadd.xlane.f32.xlu2 %v1567_v11 }
 0x24f   : > { %v1517_v12 = vpop.xlane.xlu2 %1516 }
 0x250   : > { %1534 = vst.msk [vmem:[%s205_s25] sm:$0xff] %vm1533_vm11, %v1517_v12 }
 0x257   : > { %v1522_v50 = vpop.xlane.xlu0 %1521  ;;  %v1554_v15 = vpop.xlane.xlu2 %1553 }
 0x258   : > { %1535 = vst.msk [vmem:[%s205_s25 + $0x8] sm:$0xff] %vm1533_vm11, %v1522_v50 }
 0x259   : > { %1570 = vst.msk [vmem:[%s210_s28] sm:$0xff] %vm1533_vm11, %v1554_v15 }
 0x25f   : > { %v1527_v34 = vpop.xlane.xlu1 %1526  ;;  %v1559_v3 = vpop.xlane.xlu0 %1558 }
 0x260   : > { %1536 = vst.msk [vmem:[%s205_s25 + $0x10] sm:$0xff] %vm1533_vm11, %v1527_v34 }
 0x261   : > { %1571 = vst.msk [vmem:[%s210_s28 + $0x8] sm:$0xff] %vm1533_vm11, %v1559_v3 }
 0x267   : > { %v1564_v36 = vpop.xlane.xlu1 %1563  ;;  %v1532_v57 = vpop.xlane.xlu2 %1531 }
 0x268   : > { %1572 = vst.msk [vmem:[%s210_s28 + $0x10] sm:$0xff] %vm1533_vm11, %v1564_v36 }
 0x269   : > { %1537 = vst.msk [vmem:[%s205_s25 + $0x18] sm:$0xff] %vm1533_vm11, %v1532_v57 }
 0x26f   : > { %v1569_v14 = vpop.xlane.xlu2 %1568 }
 0x270   : > { %1573 = vst.msk [vmem:[%s210_s28 + $0x18] sm:$0xff] %vm1533_vm11, %v1569_v14 }
 0x271 PF: > { %s15_s15 = sadd.s32 1, %s1844_s15  }
 0x272   : > { %p12_p4 = scmp.ge.s32.totalorder %s15_s15, 4  }
 0x274   :  { %14 = sbr.rel (!%p12_p4) target bundleno = 1 (0x1), region = 83 }

// kernel: layer1_forward.3
= control target key start
LH: loop header
LB: loop body
LE: loop exit
PB: predicated region body
PF: predicated region fallthrough
CT: control target
= control target key end

     0   :  { %s2078_s12 = smov 0   ;;  %s2828_s0 = inlined_call_operand.vmem [shape: f32[2,4,324], index: 0, kind: input, shape index: {}]   ;;  %s2829_s1 = inlined_call_operand.vmem [shape: f32[32,36], index: 1, kind: input, shape index: {}]   ;;  %s2830_s2 = inlined_call_operand.vmem [shape: f32[32,1], index: 2, kind: input, shape index: {}]   ;;  %s2831_s3 = inlined_call_operand.vmem [shape: f32[2,32,256], index: 3, kind: output, shape index: {}]  }
   0x1 LB: > { %s1845_s13 = sadd.s32 4294967295, %s2034_s12   ;;  %p1849_p0 = scmp.ge.s32.totalorder %s2034_s12, 1  ;;  %s2034_s12 = sphi %s2078_s12, %s13_s12  }
   0x2   : > { %p137_p1 = scmp.lt.s32.totalorder %s2034_s12, 3 }
   0x4   : > { %p138_p2 = pnand %p1849_p0, %p137_p1 }
   0x5   : > { %p161_p3 = scmp.lt.s32.totalorder (!%p138_p2), %s1845_s13, 1  ;;  %s2036_s16 = smov (!%p138_p2), 124  }
   0x6   : > { %141 = sbr.rel (%p138_p2) target bundleno = 759 (0x2f7), region = 32  ;;  %s2037_s23 = smov (!%p138_p2), 127  }
   0x7   : > { %s2038_s28 = smov (!%p138_p2), 126   ;;  %s2039_s29 = smov (!%p138_p2), 120  }
   0x8   : > { %s2040_s30 = smov (!%p138_p2), 110   ;;  %s2041_s4 = smov (!%p138_p2), 116  }
   0x9   : > { %s2042_s5 = smov (!%p138_p2), 109   ;;  %s2043_s6 = smov (!%p138_p2), 112  }
   0xa   : > { %s2044_s7 = smov (!%p138_p2), 108   ;;  %s2045_s8 = smov (!%p138_p2), 92  }
   0xb   : > { %v2089_v0 = vld [vmem:[%s2829_s1 + $0x8] sm:$0xff]  ;;  %s2833_s13 = smov (!%p161_p3, %s1845_s13), 1  ;;  %v2098_v1 = vld [vmem:[%s2829_s1] sm:$0xff]  ;;  %v2116_v7 = vld [vmem:[%s2829_s1 + $0x10] sm:$0xff]  ;;  %s2046_s9 = smov 104   ;;  %vm215_vm0 = vcmask 1043456  }
   0xc   : > { %183 = vrot.lane.b32.xlu1 %v2089_v0, %s2036_s16  ;;  %181 = vrot.lane.b32.xlu2 %v2098_v1, %s2036_s16  ;;  %s1994_s19 = smul.u32 12, %s2833_s13  ;;  %v2133_v13 = vld [vmem:[%s2829_s1 + $0x18] sm:$0xff]  ;;  %vm206_vm1 = vcmask 31744   ;;  %s2047_s10 = smov 91   ;;  %vm203_vm2 = vcmask 1039360   ;;  %vm448_vm3 = vcmask 1031168  }
   0xd   : > { %s2048_s11 = smov 100   ;;  %s2049_s14 = smov 96   ;;  %vm596_vm4 = vcmask 900096   ;;  %vm744_vm5 = vcmask 891904   ;;  %vm892_vm6 = vcmask 883712   ;;  %vm1040_vm7 = vcmask 752640  }
   0xe   : > { %s2106_s22 = scalar_lea.vmem %s2828_s0, %s1994_s19  ;;  %s2050_s15 = smov 90   ;;  %vm1188_vm8 = vcmask 744448   ;;  %vm1336_vm9 = vcmask 736256   ;;  %vm1500_vm10 = vcmask 130048   ;;  %vm1521_vm11 = vcmask 261248  }
   0xf   : > { %v172_v2 = vld [vmem:[%s2106_s22 + $0x8] sm:$0xf]  ;;  %v2110_v3 = vld [vmem:[%s2106_s22] sm:$0xff]  ;;  %s1990_s25 = sshll.u32 %s2833_s13, 6  ;;  %s2052_s13 = smov 122   ;;  %vm1538_vm12 = vcmask 392448  }
  0x10   : > { %193 = vst [vmem:[#allocation1 + $0x10] ss:$2 sm:$0xff] %v172_v2  ;;  %v417_v8 = vld [vmem:[%s2106_s22 + $0x8] sm:$0xf]  ;;  %s2057_s17 = smov 98   ;;  %vm1555_vm13 = vcmask 523648  }
  0x11   : > { %191 = vst [vmem:[#allocation1] ss:$2 sm:$0xff] %v2110_v3  ;;  %v565_v12 = vld [vmem:[%s2106_s22 + $0x8] sm:$0xf]  ;;  %vm1572_vm14 = vcmask 654848   ;;  %vm1589_vm15 = vcmask 786048  }
  0x12   : > { %v713_v17 = vld [vmem:[%s2106_s22 + $0x8] sm:$0xf] }
  0x13   : > { %v861_v21 = vld [vmem:[%s2106_s22 + $0x8] sm:$0xf] }
  0x14   : > { %185 = vrot.lane.b32.xlu2 %v2116_v7, %s2036_s16  ;;  %v1009_v26 = vld [vmem:[%s2106_s22 + $0x8] sm:$0xf] }
  0x15   : > { %v1157_v33 = vld [vmem:[%s2106_s22 + $0x8] sm:$0xf] }
  0x16   : > { %v1305_v37 = vld [vmem:[%s2106_s22 + $0x8] sm:$0xf] }
  0x17   : > { %v196_v4 = vld.sshfl [vmem:[#allocation1 + $0x10] sm:$0xff pattern:$0x75316420] }
  0x18   : > { %201 = vrot.lane.b32.xlu1 %v196_v4, %s2037_s23  ;;  %311 = vst [vmem:[#allocation1 + $0x10] ss:$2 sm:$0xff] %v172_v2  ;;  %v194_v5 = vld.sshfl [vmem:[#allocation1] sm:$0xff pattern:$0x75316420] }
  0x19   : > { %197 = vrot.lane.b32.xlu0 %v194_v5, %s2037_s23  ;;  %v195_v6 = vld.sshfl [vmem:[#allocation1 + $0x8] sm:$0xff pattern:$0x75316420] }
  0x1a   : > { %309 = vst [vmem:[#allocation1] ss:$2 sm:$0xff] %v2110_v3 }
  0x1f   : > { %v2122_v9 = vld.sshfl [vmem:[#allocation1 + $0x10] sm:$0xff pattern:$0x75316420] }
  0x20   : > { %438 = vst [vmem:[#allocation1 + $0x10] ss:$2 sm:$0xff] %v417_v8 }
  0x21   : > { %199 = vrot.lane.b32.xlu0 %v195_v6, %s2037_s23  ;;  %v2124_v10 = vld.sshfl [vmem:[#allocation1] sm:$0xff pattern:$0x75316420]  ;;  %v2126_v11 = vld.sshfl [vmem:[#allocation1 + $0x8] sm:$0xff pattern:$0x75316420] }
  0x22   : > { %436 = vst [vmem:[#allocation1] ss:$2 sm:$0xff] %v2110_v3 }
  0x27   : > { %v441_v14 = vld.sshfl [vmem:[#allocation1 + $0x10] sm:$0xff pattern:$0x75316420] }
  0x28   : > { %586 = vst [vmem:[#allocation1 + $0x10] ss:$2 sm:$0xff] %v565_v12 }
  0x29   : > { %187 = vrot.lane.b32.xlu0 %v2133_v13, %s2036_s16  ;;  %v439_v15 = vld.sshfl [vmem:[#allocation1] sm:$0xff pattern:$0x75316420]  ;;  %v440_v16 = vld.sshfl [vmem:[#allocation1 + $0x8] sm:$0xff pattern:$0x75316420] }
  0x2a   : > { %442 = vrot.lane.b32.xlu1 %v439_v15, %s2038_s28  ;;  %444 = vrot.lane.b32.xlu2 %v440_v16, %s2038_s28  ;;  %584 = vst [vmem:[#allocation1] ss:$2 sm:$0xff] %v2110_v3 }
  0x2f   : > { %v589_v18 = vld.sshfl [vmem:[#allocation1 + $0x10] sm:$0xff pattern:$0x75316420] }
  0x30   : > { %734 = vst [vmem:[#allocation1 + $0x10] ss:$2 sm:$0xff] %v713_v17 }
  0x31   : > { %426 = vrot.lane.b32.xlu0 %v2098_v1, %s2039_s29  ;;  %v587_v19 = vld.sshfl [vmem:[#allocation1] sm:$0xff pattern:$0x75316420]  ;;  %v588_v20 = vld.sshfl [vmem:[#allocation1 + $0x8] sm:$0xff pattern:$0x75316420] }
  0x32   : > { %428 = vrot.lane.b32.xlu1 %v2089_v0, %s2039_s29  ;;  %732 = vst [vmem:[#allocation1] ss:$2 sm:$0xff] %v2110_v3  ;;  %430 = vrot.lane.b32.xlu2 %v2116_v7, %s2039_s29 }
  0x37   : > { %v737_v22 = vld.sshfl [vmem:[#allocation1 + $0x10] sm:$0xff pattern:$0x75316420] }
  0x38   : > { %882 = vst [vmem:[#allocation1 + $0x10] ss:$2 sm:$0xff] %v861_v21 }
  0x39   : > { %432 = vrot.lane.b32.xlu0 %v2133_v13, %s2039_s29  ;;  %v736_v23 = vld.sshfl [vmem:[#allocation1 + $0x8] sm:$0xff pattern:$0x75316420]  ;;  %v735_v24 = vld.sshfl [vmem:[#allocation1] sm:$0xff pattern:$0x75316420] }
  0x3a   : > { %446 = vrot.lane.b32.xlu1 %v441_v14, %s2038_s28  ;;  %592 = vrot.lane.b32.xlu2 %v588_v20, %s2040_s30  ;;  %880 = vst [vmem:[#allocation1] ss:$2 sm:$0xff] %v2110_v3 }
  0x3f   : > { %v885_v25 = vld.sshfl [vmem:[#allocation1 + $0x10] sm:$0xff pattern:$0x75316420] }
  0x40   : > { %1030 = vst [vmem:[#allocation1 + $0x10] ss:$2 sm:$0xff] %v1009_v26 }
  0x41   : > { %594 = vrot.lane.b32.xlu0 %v589_v18, %s2040_s30  ;;  %v884_v27 = vld.sshfl [vmem:[#allocation1 + $0x8] sm:$0xff pattern:$0x75316420]  ;;  %v883_v28 = vld.sshfl [vmem:[#allocation1] sm:$0xff pattern:$0x75316420] }
  0x42   : > { %590 = vrot.lane.b32.xlu1 %v587_v19, %s2040_s30  ;;  %574 = vrot.lane.b32.xlu2 %v2098_v1, %s2041_s4  ;;  %1028 = vst [vmem:[#allocation1] ss:$2 sm:$0xff] %v2110_v3 }
  0x47   : > { %v1033_v32 = vld.sshfl [vmem:[#allocation1 + $0x10] sm:$0xff pattern:$0x75316420] }
  0x48   : > { %1178 = vst [vmem:[#allocation1 + $0x10] ss:$2 sm:$0xff] %v1157_v33 }
  0x49   : > { %576 = vrot.lane.b32.xlu0 %v2089_v0, %s2041_s4  ;;  %v1032_v29 = vld.sshfl [vmem:[#allocation1 + $0x8] sm:$0xff pattern:$0x75316420]  ;;  %v1031_v30 = vld.sshfl [vmem:[#allocation1] sm:$0xff pattern:$0x75316420] }
  0x4a   : > { %578 = vrot.lane.b32.xlu1 %v2116_v7, %s2041_s4  ;;  %580 = vrot.lane.b32.xlu2 %v2133_v13, %s2041_s4  ;;  %1176 = vst [vmem:[#allocation1] ss:$2 sm:$0xff] %v2110_v3 }
  0x4f   : > { %v1181_v36 = vld.sshfl [vmem:[#allocation1 + $0x10] sm:$0xff pattern:$0x75316420] }
  0x50   : > { %1326 = vst [vmem:[#allocation1 + $0x10] ss:$2 sm:$0xff] %v1305_v37 }
  0x51   : > { %740 = vrot.lane.b32.xlu0 %v736_v23, %s2042_s5  ;;  %v1180_v39 = vld.sshfl [vmem:[#allocation1 + $0x8] sm:$0xff pattern:$0x75316420]  ;;  %v1179_v47 = vld.sshfl [vmem:[#allocation1] sm:$0xff pattern:$0x75316420] }
  0x52   : > { %742 = vrot.lane.b32.xlu1 %v737_v22, %s2042_s5  ;;  %722 = vrot.lane.b32.xlu2 %v2098_v1, %s2043_s6  ;;  %1324 = vst [vmem:[#allocation1] ss:$2 sm:$0xff] %v2110_v3 }
  0x57   : > { %v1329_v52 = vld.sshfl [vmem:[#allocation1 + $0x10] sm:$0xff pattern:$0x75316420] }
  0x59   : > { %738 = vrot.lane.b32.xlu0 %v735_v24, %s2042_s5  ;;  %v1328_v53 = vld.sshfl [vmem:[#allocation1 + $0x8] sm:$0xff pattern:$0x75316420]  ;;  %v1327_v61 = vld.sshfl [vmem:[#allocation1] sm:$0xff pattern:$0x75316420]  ;;  %s2566_s5 = scalar_lea.vmem %s2831_s3, %s1990_s25 }
  0x5a   : > { %726 = vrot.lane.b32.xlu2 %v2116_v7, %s2043_s6  ;;  %724 = vrot.lane.b32.xlu1 %v2089_v0, %s2043_s6 }
  0x61   : > { %728 = vrot.lane.b32.xlu0 %v2133_v13, %s2043_s6 }
  0x62   : > { %870 = vrot.lane.b32.xlu1 %v2098_v1, %s2044_s7  ;;  %886 = vrot.lane.b32.xlu2 %v883_v28, %s2044_s7 }
  0x66   : > { %v2184_v31 = vpop.permute.xlu2 %181 }
  0x69   : > { %888 = vrot.lane.b32.xlu0 %v884_v27, %s2044_s7 }
  0x6a   : > { %1036 = vrot.lane.b32.xlu2 %v1032_v29, %s2045_s8  ;;  %1034 = vrot.lane.b32.xlu1 %v1031_v30, %s2045_s8 }
  0x6e   : > { %v186_v34 = vpop.permute.xlu2 %185 }
  0x71   : > { %890 = vrot.lane.b32.xlu0 %v885_v25, %s2044_s7 }
  0x72   : > { %872 = vrot.lane.b32.xlu2 %v2089_v0, %s2044_s7  ;;  %1018 = vrot.lane.b32.xlu1 %v2098_v1, %s2046_s9 }
  0x79   : > { %1020 = vrot.lane.b32.xlu0 %v2089_v0, %s2046_s9 }
  0x7a   : > { %1022 = vrot.lane.b32.xlu2 %v2116_v7, %s2046_s9  ;;  %874 = vrot.lane.b32.xlu1 %v2116_v7, %s2044_s7 }
  0x7e   : > { %v184_v35 = vpop.permute.xlu1 %183 }
  0x81   : > { %876 = vrot.lane.b32.xlu0 %v2133_v13, %s2044_s7 }
  0x82   : > { %1038 = vrot.lane.b32.xlu2 %v1033_v32, %s2045_s8  ;;  %1024 = vrot.lane.b32.xlu1 %v2133_v13, %s2046_s9  ;;  %s2053_s8 = smov 118  }
  0x84   : > { %v2198_v38 = vpop.permute.xlu2 %444 }
  0x89   : > { %1184 = vrot.lane.b32.xlu0 %v1180_v39, %s2047_s10 }
  0x8a   : > { %v202_v40 = vpop.permute.xlu1 %201  ;;  %1186 = vrot.lane.b32.xlu1 %v1181_v36, %s2047_s10  ;;  %1182 = vrot.lane.b32.xlu2 %v1179_v47, %s2047_s10  ;;  %s2054_s10 = smov 114  }
  0x8b   : > { %v198_v41 = vpop.permute.xlu0 %197  ;;  %1993 = vmatpush.msk.msra.mxu2 %vm215_vm0, %v202_v40 }
  0x8c   : > { %1865 = vmatmul.msk.f32.vlgmr.msra.gmra.mxu2 %vm206_vm1, %v184_v35  ;;  %v2204_v42 = vpop.permute.xlu2 %430 }
  0x91   : > { %1166 = vrot.lane.b32.xlu0 %v2098_v1, %s2048_s11 }
  0x92   : > { %1168 = vrot.lane.b32.xlu1 %v2089_v0, %s2048_s11  ;;  %1170 = vrot.lane.b32.xlu2 %v2116_v7, %s2048_s11 }
  0x93   : > { %v200_v43 = vpop.permute.xlu0 %199 }
  0x94   : > { %v204_v44 = vsel %vm203_vm2, %v198_v41, %v200_v43  ;;  %v205_v45 = vsel %vm203_vm2, %v200_v43, %v202_v40  ;;  %1866 = vmatmul.msk.f32.gmra.mxu2 %vm206_vm1, %v186_v34  ;;  %v2211_v46 = vpop.permute.xlu2 %592  ;;  %vm1640_vm2 = vcmask 1048448  }
  0x95   : > { %1853 = vmatpush.msk.msra.mxu0 %vm215_vm0, %v204_v44  ;;  %1991 = vmatpush.msk.msra.mxu3 %vm215_vm0, %v204_v44 }
  0x96   : > { %1992 = vmatpush.msk.msra.mxu1 %vm215_vm0, %v205_v45  ;;  %1854 = vmatmul.msk.f32.vlgmr.msra.gmra.mxu0 %vm206_vm1, %v2184_v31 }
  0x97   : > { %1855 = vmatmul.msk.f32.vlgmr.msra.gmra.mxu3 %vm206_vm1, %v184_v35  ;;  %1858 = vmatpush.msk.msrb.mxu0 %vm215_vm0, %v205_v45 }
  0x98   : > { %1860 = vmatmul.msk.f32.vlgmr.msra.gmra.mxu1 %vm206_vm1, %v184_v35  ;;  %1868 = vmatpush.msk.msrb.mxu3 %vm215_vm0, %v2124_v10 }
  0x99   : > { %1863 = vmatpush.msk.msra.mxu0 %vm215_vm0, %v202_v40  ;;  %1878 = vmatpush.msk.msrb.mxu1 %vm215_vm0, %v2122_v9 }
  0x9a   : > { %1314 = vrot.lane.b32.xlu1 %v2098_v1, %s2049_s14  ;;  %1172 = vrot.lane.b32.xlu0 %v2133_v13, %s2048_s11 }
  0x9b   : > { %v188_v48 = vpop.permute.xlu0 %187  ;;  %1316 = vrot.lane.b32.xlu2 %v2089_v0, %s2049_s14 }
  0x9c   : > { %v443_v49 = vpop.permute.xlu1 %442  ;;  %1867 = vmatmul.msk.f32.gmra.mxu2 %vm206_vm1, %v188_v48  ;;  %v2232_v50 = vpop.permute.xlu2 %574 }
  0x9d   : > { %v449_v51 = vsel %vm448_vm3, %v443_v49, %v2198_v38 }
  0x9e   : > { %1859 = vmatmul.msk.f32.vlgmr.msrb.gmra.mxu0 %vm206_vm1, %v2184_v31  ;;  %1883 = vmatpush.msk.msrb.mxu2 %vm215_vm0, %v449_v51 }
  0x9f   : > { %1856 = vmatmul.msk.f32.gmra.mxu3 %vm206_vm1, %v186_v34  ;;  %1873 = vmatpush.msk.msrb.mxu0 %vm215_vm0, %v2126_v11 }
  0xa0   : > { %1861 = vmatmul.msk.f32.gmra.mxu1 %vm206_vm1, %v186_v34 }
  0xa2   : > { %1334 = vrot.lane.b32.xlu1 %v1329_v52, %s2050_s15  ;;  %1332 = vrot.lane.b32.xlu0 %v1328_v53, %s2050_s15 }
  0xa3   : > { %v427_v54 = vpop.permute.xlu0 %426  ;;  %1330 = vrot.lane.b32.xlu2 %v1327_v61, %s2050_s15  ;;  %s2056_s15 = smov 102  }
  0xa4   : > { %v2245_v55 = vpop.permute.xlu1 %428  ;;  %1884 = vmatmul.msk.f32.vlgmr.msrb.gmra.mxu2 %vm206_vm1, %v427_v54  ;;  %v2248_v56 = vpop.permute.xlu2 %580 }
  0xa6   : > { %1864 = vmatmul.msk.f32.vlgmr.msra.gmra.mxu0 %vm206_vm1, %v2184_v31 }
  0xa7   : > { %1857 = vmatmul.msk.f32.gmra.mxu3 %vm206_vm1, %v188_v48 }
  0xa8   : > { %1862 = vmatmul.msk.f32.gmra.mxu1 %vm206_vm1, %v188_v48 }
  0xaa   : > { %1318 = vrot.lane.b32.xlu0 %v2116_v7, %s2049_s14  ;;  %1320 = vrot.lane.b32.xlu1 %v2133_v13, %s2049_s14  ;;  %s2055_s14 = smov 106  }
  0xab   : > { %v2256_v57 = vpop.permute.xlu0 %432 }
  0xac   : > { %v447_v58 = vpop.permute.xlu1 %446  ;;  %1885 = vmatmul.msk.f32.gmra.mxu2 %vm206_vm1, %v2245_v55  ;;  %v2267_v60 = vpop.permute.xlu2 %722 }
  0xad   : > { %v450_v59 = vsel %vm448_vm3, %v2198_v38, %v447_v58  ;;  %1893 = vmatpush.msk.msra.mxu0 %vm215_vm0, %v447_v58  ;;  %vm1761_vm3 = vcmask 818176  }
  0xae   : > { %1874 = vmatmul.msk.f32.vlgmr.msrb.gmra.mxu0 %vm206_vm1, %v2098_v1  ;;  %1888 = vmatpush.msk.msra.mxu3 %vm215_vm0, %v450_v59 }
  0xaf   : > { %1869 = vmatmul.msk.f32.vlgmr.msrb.gmra.mxu3 %vm206_vm1, %v2098_v1 }
  0xb0   : > { %1879 = vmatmul.msk.f32.vlgmr.msrb.gmra.mxu1 %vm206_vm1, %v2098_v1 }
  0xb3   : > { %v595_v62 = vpop.permute.xlu0 %594 }
  0xb4   : > { %v598_v63 = vsel %vm596_vm4, %v2211_v46, %v595_v62  ;;  %v591_v2 = vpop.permute.xlu1 %590  ;;  %1886 = vmatmul.msk.f32.gmra.mxu2 %vm206_vm1, %v2204_v42  ;;  %1908 = vmatpush.msk.msrb.mxu3 %vm215_vm0, %v595_v62  ;;  %v2286_v1 = vpop.permute.xlu2 %726 }
  0xb5   : > { %v597_v3 = vsel %vm596_vm4, %v591_v2, %v2211_v46  ;;  %1903 = vmatpush.msk.msra.mxu2 %vm215_vm0, %v598_v63 }
  0xb6   : > { %1875 = vmatmul.msk.f32.gmra.mxu0 %vm206_vm1, %v2089_v0  ;;  %1898 = vmatpush.msk.msra.mxu1 %vm215_vm0, %v597_v3 }
  0xb7   : > { %1870 = vmatmul.msk.f32.gmra.mxu3 %vm206_vm1, %v2089_v0 }
  0xb8   : > { %1880 = vmatmul.msk.f32.gmra.mxu1 %vm206_vm1, %v2089_v0 }
  0xbb   : > { %v2288_v4 = vpop.permute.xlu0 %576 }
  0xbc   : > { %v2290_v5 = vpop.permute.xlu1 %578  ;;  %1887 = vmatmul.msk.f32.gmra.mxu2 %vm206_vm1, %v2256_v57  ;;  %v887_v0 = vpop.permute.xlu2 %886 }
  0xbe   : > { %1876 = vmatmul.msk.f32.gmra.mxu0 %vm206_vm1, %v2116_v7 }
  0xbf   : > { %1871 = vmatmul.msk.f32.gmra.mxu3 %vm206_vm1, %v2116_v7 }
  0xc0   : > { %1881 = vmatmul.msk.f32.gmra.mxu1 %vm206_vm1, %v2116_v7 }
  0xc3   : > { %v741_v6 = vpop.permute.xlu0 %740 }
  0xc4   : > { %v743_v8 = vpop.permute.xlu1 %742  ;;  %1904 = vmatmul.msk.f32.vlgmr.msra.gmra.mxu2 %vm206_vm1, %v2232_v50  ;;  %v1037_v11 = vpop.permute.xlu2 %1036 }
  0xc5   : > { %v746_v9 = vsel %vm744_vm5, %v741_v6, %v743_v8  ;;  %1923 = vmatpush.msk.msrb.mxu2 %vm215_vm0, %v743_v8 }
  0xc6   : > { %1877 = vmatmul.msk.f32.gmra.mxu0 %vm206_vm1, %v2133_v13  ;;  %1918 = vmatpush.msk.msrb.mxu1 %vm215_vm0, %v746_v9 }
  0xc7   : > { %1872 = vmatmul.msk.f32.gmra.mxu3 %vm206_vm1, %v2133_v13 }
  0xc8   : > { %1882 = vmatmul.msk.f32.gmra.mxu1 %vm206_vm1, %v2133_v13 }
  0xcb   : > { %v739_v7 = vpop.permute.xlu0 %738 }
  0xcc   : > { %v745_v10 = vsel %vm744_vm5, %v739_v7, %v741_v6  ;;  %1905 = vmatmul.msk.f32.gmra.mxu2 %vm206_vm1, %v2288_v4  ;;  %v725_v12 = vpop.permute.xlu1 %724  ;;  %v2325_v15 = vpop.permute.xlu2 %872 }
  0xcd   : > { %1913 = vmatpush.msk.msrb.mxu0 %vm215_vm0, %v745_v10 }
  0xce   : > { %1894 = vmatmul.msk.f32.vlgmr.msra.gmra.mxu0 %vm206_vm1, %v427_v54 }
  0xcf   : > { %1889 = vmatmul.msk.f32.vlgmr.msra.gmra.mxu3 %vm206_vm1, %v427_v54 }
  0xd0   : > { %1899 = vmatmul.msk.f32.vlgmr.msra.gmra.mxu1 %vm206_vm1, %v2232_v50 }
  0xd3   : > { %v2317_v14 = vpop.permute.xlu0 %728 }
  0xd4   : > { %1906 = vmatmul.msk.f32.gmra.mxu2 %vm206_vm1, %v2290_v5  ;;  %v2321_v13 = vpop.permute.xlu1 %870  ;;  %v2342_v20 = vpop.permute.xlu2 %1022 }
  0xd6   : > { %1895 = vmatmul.msk.f32.gmra.mxu0 %vm206_vm1, %v2245_v55 }
  0xd7   : > { %1890 = vmatmul.msk.f32.gmra.mxu3 %vm206_vm1, %v2245_v55 }
  0xd8   : > { %1900 = vmatmul.msk.f32.gmra.mxu1 %vm206_vm1, %v2288_v4 }
  0xdb   : > { %v889_v16 = vpop.permute.xlu0 %888 }
  0xdc   : > { %v893_v17 = vsel %vm892_vm6, %v887_v0, %v889_v16  ;;  %1907 = vmatmul.msk.f32.gmra.mxu2 %vm206_vm1, %v2248_v56  ;;  %v1035_v18 = vpop.permute.xlu1 %1034  ;;  %v1039_v24 = vpop.permute.xlu2 %1038 }
  0xdd   : > { %1928 = vmatpush.msk.msra.mxu3 %vm215_vm0, %v893_v17  ;;  %v1041_v19 = vsel %vm1040_vm7, %v1035_v18, %v1037_v11  ;;  %v1042_v27 = vsel %vm1040_vm7, %v1037_v11, %v1039_v24 }
  0xde   : > { %1896 = vmatmul.msk.f32.gmra.mxu0 %vm206_vm1, %v2204_v42  ;;  %1943 = vmatpush.msk.msra.mxu2 %vm215_vm0, %v1041_v19 }
  0xdf   : > { %1891 = vmatmul.msk.f32.gmra.mxu3 %vm206_vm1, %v2204_v42 }
  0xe0   : > { %1901 = vmatmul.msk.f32.gmra.mxu1 %vm206_vm1, %v2290_v5 }
  0xe3   : > { %v891_v21 = vpop.permute.xlu0 %890 }
  0xe4   : > { %v894_v22 = vsel %vm892_vm6, %v889_v16, %v891_v21  ;;  %1924 = vmatmul.msk.f32.vlgmr.msrb.gmra.mxu2 %vm206_vm1, %v2267_v60  ;;  %1938 = vmatpush.msk.msra.mxu1 %vm215_vm0, %v891_v21  ;;  %v2347_v23 = vpop.permute.xlu1 %1018  ;;  %v1183_v30 = vpop.permute.xlu2 %1182  ;;  %v2051_v21 = vmov 0  }
  0xe5   : > { %1933 = vmatpush.msk.msra.mxu0 %vm215_vm0, %v894_v22  ;;  %2026 = vset.pattern.permute.xlu0 %v2051_v21  ;;  %v1453_v22 = vld [vmem:[%s2830_s2 + $0x8] sm:$0xff] }
  0xe6   : > { %1897 = vmatmul.msk.f32.gmra.mxu0 %vm206_vm1, %v2256_v57  ;;  %1463 = vperm.xlu0 %2026, %v1453_v22  }
  0xe7   : > { %1892 = vmatmul.msk.f32.gmra.mxu3 %vm206_vm1, %v2256_v57  ;;  %2027 = vset.pattern.permute.xlu1 %v2051_v21 }
  0xe8   : > { %1902 = vmatmul.msk.f32.gmra.mxu1 %vm206_vm1, %v2248_v56  ;;  %2025 = vset.pattern.permute.xlu2 %v2051_v21 }
  0xeb   : > { %v2356_v25 = vpop.permute.xlu0 %1020 }
  0xec   : > { %1925 = vmatmul.msk.f32.gmra.mxu2 %vm206_vm1, %v725_v12  ;;  %v2359_v26 = vpop.permute.xlu1 %874  ;;  %v2390_v35 = vpop.permute.xlu2 %1170 }
  0xee   : > { %1914 = vmatmul.msk.f32.vlgmr.msrb.gmra.mxu0 %vm206_vm1, %v2267_v60 }
  0xef   : > { %1909 = vmatmul.msk.f32.vlgmr.msrb.gmra.mxu3 %vm206_vm1, %v2232_v50  ;;  %1953 = vmatpush.msk.msrb.mxu0 %vm215_vm0, %v1039_v24 }
  0xf0   : > { %1919 = vmatmul.msk.f32.vlgmr.msrb.gmra.mxu1 %vm206_vm1, %v2267_v60  ;;  %1948 = vmatpush.msk.msrb.mxu3 %vm215_vm0, %v1042_v27 }
  0xf3   : > { %v2370_v28 = vpop.permute.xlu0 %876 }
  0xf4   : > { %1926 = vmatmul.msk.f32.gmra.mxu2 %vm206_vm1, %v2286_v1  ;;  %v2374_v29 = vpop.permute.xlu1 %1024 }
  0xf5   : > { %v2404_v38 = vpop.permute.xlu2 %1316 }
  0xf6   : > { %1915 = vmatmul.msk.f32.gmra.mxu0 %vm206_vm1, %v725_v12 }
  0xf7   : > { %1910 = vmatmul.msk.f32.gmra.mxu3 %vm206_vm1, %v2288_v4 }
  0xf8   : > { %1920 = vmatmul.msk.f32.gmra.mxu1 %vm206_vm1, %v725_v12 }
  0xfb   : > { %v1185_v31 = vpop.permute.xlu0 %1184 }
  0xfc   : > { %1927 = vmatmul.msk.f32.gmra.mxu2 %vm206_vm1, %v2317_v14  ;;  %v1187_v32 = vpop.permute.xlu1 %1186  ;;  %v1189_v33 = vsel %vm1188_vm8, %v1183_v30, %v1185_v31 }
  0xfd   : > { %v1190_v34 = vsel %vm1188_vm8, %v1185_v31, %v1187_v32  ;;  %1958 = vmatpush.msk.msrb.mxu1 %vm215_vm0, %v1189_v33  ;;  %v1331_v42 = vpop.permute.xlu2 %1330  ;;  %v1454_v31 = vld [vmem:[%s2830_s2 + $0x10] sm:$0xff] }
  0xfe   : > { %1916 = vmatmul.msk.f32.gmra.mxu0 %vm206_vm1, %v2286_v1  ;;  %1963 = vmatpush.msk.msrb.mxu2 %vm215_vm0, %v1190_v34 }
  0xff   : > { %1911 = vmatmul.msk.f32.gmra.mxu3 %vm206_vm1, %v2290_v5  ;;  %1468 = vperm.xlu1 %2027, %v1454_v31  }
 0x100   : > { %1921 = vmatmul.msk.f32.gmra.mxu1 %vm206_vm1, %v2286_v1 }
 0x103   : > { %v2396_v37 = vpop.permute.xlu0 %1166 }
 0x104   : > { %1944 = vmatmul.msk.f32.vlgmr.msra.gmra.mxu2 %vm206_vm1, %v2347_v23  ;;  %v2394_v36 = vpop.permute.xlu1 %1168 }
 0x106   : > { %1917 = vmatmul.msk.f32.gmra.mxu0 %vm206_vm1, %v2317_v14 }
 0x107   : > { %1912 = vmatmul.msk.f32.gmra.mxu3 %vm206_vm1, %v2248_v56 }
 0x108   : > { %1922 = vmatmul.msk.f32.gmra.mxu1 %vm206_vm1, %v2317_v14 }
 0x10c   : > { %1945 = vmatmul.msk.f32.gmra.mxu2 %vm206_vm1, %v2356_v25  ;;  %v2408_v39 = vpop.permute.xlu1 %1314  ;;  %v2410_v40 = vpop.permute.xlu0 %1172 }
 0x10e   : > { %1934 = vmatmul.msk.f32.vlgmr.msra.gmra.mxu0 %vm206_vm1, %v2321_v13 }
 0x10f   : > { %1929 = vmatmul.msk.f32.vlgmr.msra.gmra.mxu3 %vm206_vm1, %v2321_v13  ;;  %v300_v41 = vpop.f32.mrf.mxu2 }
 0x110   : > { %1939 = vmatmul.msk.f32.vlgmr.msra.gmra.mxu1 %vm206_vm1, %v2321_v13  ;;  %1968 = vmatpush.msk.msra.mxu3 %vm215_vm0, %v1187_v32  ;;  %v1452_v32 = vld [vmem:[%s2830_s2] sm:$0xff] }
 0x111   : > { %1458 = vperm.xlu2 %2025, %v1452_v32  }
 0x113   : > { %v239_v43 = vpop.f32.mrf.mxu0 }
 0x114   : > { %1946 = vmatmul.msk.f32.gmra.mxu2 %vm206_vm1, %v2342_v20  ;;  %v1335_v44 = vpop.permute.xlu1 %1334  ;;  %v1333_v45 = vpop.permute.xlu0 %1332 }
 0x115   : > { %v271_v46 = vpop.f32.mrf.mxu1  ;;  %v1338_v47 = vsel %vm1336_vm9, %v1333_v45, %v1335_v44  ;;  %v1337_v48 = vsel %vm1336_vm9, %v1331_v42, %v1333_v45  ;;  %1983 = vmatpush.msk.msra.mxu2 %vm215_vm0, %v1335_v44 }
 0x116   : > { %1935 = vmatmul.msk.f32.gmra.mxu0 %vm206_vm1, %v2325_v15  ;;  %1978 = vmatpush.msk.msra.mxu1 %vm215_vm0, %v1338_v47  ;;  %v1455_v47 = vld [vmem:[%s2830_s2 + $0x18] sm:$0xff] }
 0x117   : > { %1930 = vmatmul.msk.f32.gmra.mxu3 %vm206_vm1, %v2325_v15  ;;  %v303_v49 = vpop.f32.mrf.mxu2  ;;  %1973 = vmatpush.msk.msra.mxu0 %vm215_vm0, %v1337_v48  ;;  %vm1606_vm0 = vcmask 917248  }
 0x118   : > { %1940 = vmatmul.msk.f32.gmra.mxu1 %vm206_vm1, %v2325_v15 }
 0x119   : > { %1473 = vperm.xlu2 %2025, %v1455_v47  }
 0x11a   : > { %v242_v50 = vpop.f32.mrf.mxu3 }
 0x11b   : > { %v268_v51 = vpop.f32.mrf.mxu0 }
 0x11c   : > { %1947 = vmatmul.msk.f32.gmra.mxu2 %vm206_vm1, %v2374_v29  ;;  %v1319_v45 = vpop.permute.xlu0 %1318 }
 0x11d   : > { %v274_v52 = vpop.f32.mrf.mxu1 }
 0x11e   : > { %1936 = vmatmul.msk.f32.gmra.mxu0 %vm206_vm1, %v2359_v26 }
 0x11f   : > { %1931 = vmatmul.msk.f32.gmra.mxu3 %vm206_vm1, %v2359_v26  ;;  %v306_v53 = vpop.f32.mrf.mxu2 }
 0x120   : > { %1941 = vmatmul.msk.f32.gmra.mxu1 %vm206_vm1, %v2359_v26 }
 0x122   : > { %v245_v54 = vpop.f32.mrf.mxu3 }
 0x123   : > { %v297_v55 = vpop.f32.mrf.mxu0 }
 0x124   : > { %1964 = vmatmul.msk.f32.vlgmr.msrb.gmra.mxu2 %vm206_vm1, %v2396_v37 }
 0x125   : > { %v277_v56 = vpop.f32.mrf.mxu1 }
 0x126   : > { %1937 = vmatmul.msk.f32.gmra.mxu0 %vm206_vm1, %v2370_v28 }
 0x127   : > { %1932 = vmatmul.msk.f32.gmra.mxu3 %vm206_vm1, %v2370_v28  ;;  %v482_v57 = vpop.f32.mrf.mxu2 }
 0x128   : > { %1942 = vmatmul.msk.f32.gmra.mxu1 %vm206_vm1, %v2370_v28 }
 0x12a   : > { %v248_v58 = vpop.f32.mrf.mxu3 }
 0x12b   : > { %v375_v59 = vpop.f32.mrf.mxu0 }
 0x12c   : > { %v2446_v60 = vadd.f32 %v375_v59, %v268_v51  ;;  %1965 = vmatmul.msk.f32.gmra.mxu2 %vm206_vm1, %v2394_v36 }
 0x12d   : > { %v404_v61 = vpop.f32.mrf.mxu1 }
 0x12e   : > { %v405_v62 = vadd.f32 %v404_v61, %v297_v55  ;;  %1954 = vmatmul.msk.f32.vlgmr.msrb.gmra.mxu0 %vm206_vm1, %v2347_v23 }
 0x12f   : > { %1949 = vmatmul.msk.f32.vlgmr.msrb.gmra.mxu3 %vm206_vm1, %v2347_v23  ;;  %v485_v63 = vpop.f32.mrf.mxu2 }
 0x130   : > { %1959 = vmatmul.msk.f32.vlgmr.msrb.gmra.mxu1 %vm206_vm1, %v2396_v37 }
 0x132   : > { %v346_v2 = vpop.f32.mrf.mxu3 }
 0x133   : > { %v347_v3 = vadd.f32 %v346_v2, %v239_v43  ;;  %v378_v1 = vpop.f32.mrf.mxu0 }
 0x134   : > { %v2456_v4 = vadd.f32 %v378_v1, %v271_v46  ;;  %1966 = vmatmul.msk.f32.gmra.mxu2 %vm206_vm1, %v2390_v35 }
 0x135   : > { %v407_v5 = vpop.f32.mrf.mxu1  ;;  %v552_v0 = vadd.f32 %v482_v57, %v347_v3 }
 0x136   : > { %v408_v6 = vadd.f32 %v407_v5, %v300_v41  ;;  %1955 = vmatmul.msk.f32.gmra.mxu0 %vm206_vm1, %v2356_v25 }
 0x137   : > { %1950 = vmatmul.msk.f32.gmra.mxu3 %vm206_vm1, %v2356_v25  ;;  %v488_v8 = vpop.f32.mrf.mxu2 }
 0x138   : > { %1960 = vmatmul.msk.f32.gmra.mxu1 %vm206_vm1, %v2394_v36 }
 0x13a   : > { %v349_v9 = vpop.f32.mrf.mxu3 }
 0x13b   : > { %v350_v7 = vadd.f32 %v349_v9, %v242_v50  ;;  %v381_v10 = vpop.f32.mrf.mxu0 }
 0x13c   : > { %v2466_v11 = vadd.f32 %v381_v10, %v274_v52  ;;  %1967 = vmatmul.msk.f32.gmra.mxu2 %vm206_vm1, %v2410_v40 }
 0x13d   : > { %v410_v12 = vpop.f32.mrf.mxu1  ;;  %v555_v14 = vadd.f32 %v485_v63, %v350_v7 }
 0x13e   : > { %v411_v13 = vadd.f32 %v410_v12, %v303_v49  ;;  %1956 = vmatmul.msk.f32.gmra.mxu0 %vm206_vm1, %v2342_v20 }
 0x13f   : > { %1951 = vmatmul.msk.f32.gmra.mxu3 %vm206_vm1, %v2342_v20  ;;  %v491_v15 = vpop.f32.mrf.mxu2 }
 0x140   : > { %1961 = vmatmul.msk.f32.gmra.mxu1 %vm206_vm1, %v2390_v35 }
 0x142   : > { %v352_v16 = vpop.f32.mrf.mxu3 }
 0x143   : > { %v353_v17 = vadd.f32 %v352_v16, %v245_v54  ;;  %v384_v18 = vpop.f32.mrf.mxu0 }
 0x144   : > { %v2476_v19 = vadd.f32 %v384_v18, %v277_v56  ;;  %1984 = vmatmul.msk.f32.vlgmr.msra.gmra.mxu2 %vm206_vm1, %v2408_v39 }
 0x145   : > { %v413_v23 = vpop.f32.mrf.mxu1  ;;  %v558_v20 = vadd.f32 %v488_v8, %v353_v17 }
 0x146   : > { %v414_v24 = vadd.f32 %v413_v23, %v306_v53  ;;  %1957 = vmatmul.msk.f32.gmra.mxu0 %vm206_vm1, %v2374_v29  ;;  %v1321_v53 = vpop.permute.xlu1 %1320 }
 0x147   : > { %1952 = vmatmul.msk.f32.gmra.mxu3 %vm206_vm1, %v2374_v29  ;;  %v659_v25 = vpop.f32.mrf.mxu2 }
 0x148   : > { %1962 = vmatmul.msk.f32.gmra.mxu1 %vm206_vm1, %v2410_v40 }
 0x14a   : > { %v355_v26 = vpop.f32.mrf.mxu3 }
 0x14b   : > { %v356_v27 = vadd.f32 %v355_v26, %v248_v58  ;;  %v540_v28 = vpop.f32.mrf.mxu0 }
 0x14c   : > { %v554_v30 = vadd.f32 %v540_v28, %v405_v62  ;;  %1985 = vmatmul.msk.f32.gmra.mxu2 %vm206_vm1, %v2404_v38 }
 0x14d   : > { %v630_v29 = vpop.f32.mrf.mxu1  ;;  %v561_v33 = vadd.f32 %v491_v15, %v356_v27 }
 0x14e   : > { %v700_v34 = vadd.f32 %v630_v29, %v552_v0  ;;  %1974 = vmatmul.msk.f32.vlgmr.msra.gmra.mxu0 %vm206_vm1, %v2408_v39 }
 0x14f   : > { %1969 = vmatmul.msk.f32.vlgmr.msra.gmra.mxu3 %vm206_vm1, %v2396_v37  ;;  %v662_v41 = vpop.f32.mrf.mxu2 }
 0x150   : > { %1979 = vmatmul.msk.f32.vlgmr.msra.gmra.mxu1 %vm206_vm1, %v2408_v39 }
 0x152   : > { %v511_v42 = vpop.f32.mrf.mxu3 }
 0x153   : > { %v553_v43 = vadd.f32 %v511_v42, %v2446_v60  ;;  %v543_v44 = vpop.f32.mrf.mxu0 }
 0x154   : > { %v557_v46 = vadd.f32 %v543_v44, %v408_v6  ;;  %1986 = vmatmul.msk.f32.gmra.mxu2 %vm206_vm1, %v1319_v45 }
 0x155   : > { %v633_v48 = vpop.f32.mrf.mxu1  ;;  %v701_v49 = vadd.f32 %v659_v25, %v553_v43 }
 0x156   : > { %v703_v37 = vadd.f32 %v633_v48, %v555_v14  ;;  %1975 = vmatmul.msk.f32.gmra.mxu0 %vm206_vm1, %v2404_v38 }
 0x157   : > { %1970 = vmatmul.msk.f32.gmra.mxu3 %vm206_vm1, %v2394_v36  ;;  %v665_v39 = vpop.f32.mrf.mxu2 }
 0x158   : > { %1980 = vmatmul.msk.f32.gmra.mxu1 %vm206_vm1, %v2404_v38 }
 0x15a   : > { %v514_v50 = vpop.f32.mrf.mxu3 }
 0x15b   : > { %v556_v51 = vadd.f32 %v514_v50, %v2456_v4  ;;  %v546_v52 = vpop.f32.mrf.mxu0 }
 0x15c   : > { %v560_v54 = vadd.f32 %v546_v52, %v411_v13  ;;  %1987 = vmatmul.msk.f32.gmra.mxu2 %vm206_vm1, %v1321_v53 }
 0x15d   : > { %v636_v55 = vpop.f32.mrf.mxu1  ;;  %v704_v56 = vadd.f32 %v662_v41, %v556_v51 }
 0x15e   : > { %v706_v57 = vadd.f32 %v636_v55, %v558_v20  ;;  %1976 = vmatmul.msk.f32.gmra.mxu0 %vm206_vm1, %v1319_v45 }
 0x15f   : > { %1971 = vmatmul.msk.f32.gmra.mxu3 %vm206_vm1, %v2390_v35  ;;  %v668_v36 = vpop.f32.mrf.mxu2 }
 0x160   : > { %1981 = vmatmul.msk.f32.gmra.mxu1 %vm206_vm1, %v1319_v45 }
 0x162   : > { %v517_v38 = vpop.f32.mrf.mxu3 }
 0x163   : > { %v559_v58 = vadd.f32 %v517_v38, %v2466_v11  ;;  %v549_v59 = vpop.f32.mrf.mxu0 }
 0x164   : > { %v563_v60 = vadd.f32 %v549_v59, %v414_v24 }
 0x165   : > { %v639_v61 = vpop.f32.mrf.mxu1  ;;  %v707_v62 = vadd.f32 %v665_v39, %v559_v58 }
 0x166   : > { %v709_v63 = vadd.f32 %v639_v61, %v561_v33  ;;  %1977 = vmatmul.msk.f32.gmra.mxu0 %vm206_vm1, %v1321_v53 }
 0x167   : > { %1972 = vmatmul.msk.f32.gmra.mxu3 %vm206_vm1, %v2410_v40  ;;  %v836_v2 = vpop.f32.mrf.mxu2 }
 0x168   : > { %1982 = vmatmul.msk.f32.gmra.mxu1 %vm206_vm1, %v1321_v53  ;;  %vm1631_vm1 = vcmask 932864  }
 0x16a   : > { %v520_v35 = vpop.f32.mrf.mxu3 }
 0x16b   : > { %v562_v3 = vadd.f32 %v520_v35, %v2476_v19  ;;  %v778_v1 = vpop.f32.mrf.mxu0 }
 0x16c   : > { %v2526_v4 = vadd.f32 %v778_v1, %v700_v34 }
 0x16d   : > { %v807_v5 = vpop.f32.mrf.mxu1  ;;  %v710_v0 = vadd.f32 %v668_v36, %v562_v3 }
 0x16e   : > { %v849_v6 = vadd.f32 %v807_v5, %v701_v49 }
 0x16f   : > { %v839_v8 = vpop.f32.mrf.mxu2 }
 0x172   : > { %v688_v9 = vpop.f32.mrf.mxu3 }
 0x173   : > { %v702_v7 = vadd.f32 %v688_v9, %v554_v30  ;;  %v781_v10 = vpop.f32.mrf.mxu0 }
 0x174   : > { %v2528_v11 = vadd.f32 %v781_v10, %v703_v37 }
 0x175   : > { %v810_v12 = vpop.f32.mrf.mxu1  ;;  %v850_v40 = vadd.f32 %v836_v2, %v702_v7 }
 0x176   : > { %v852_v14 = vadd.f32 %v810_v12, %v704_v56 }
 0x177   : > { %v842_v13 = vpop.f32.mrf.mxu2 }
 0x17a   : > { %v691_v15 = vpop.f32.mrf.mxu3 }
 0x17b   : > { %v705_v16 = vadd.f32 %v691_v15, %v557_v46  ;;  %v784_v17 = vpop.f32.mrf.mxu0 }
 0x17c   : > { %v2530_v18 = vadd.f32 %v784_v17, %v706_v57 }
 0x17d   : > { %v813_v19 = vpop.f32.mrf.mxu1  ;;  %v853_v21 = vadd.f32 %v839_v8, %v705_v16 }
 0x17e   : > { %v855_v22 = vadd.f32 %v813_v19, %v707_v62 }
 0x17f   : > { %v845_v23 = vpop.f32.mrf.mxu2 }
 0x182   : > { %v694_v20 = vpop.f32.mrf.mxu3 }
 0x183   : > { %v708_v24 = vadd.f32 %v694_v20, %v560_v54  ;;  %v787_v25 = vpop.f32.mrf.mxu0  ;;  %v1459_v20 = vpop.permute.xlu2 %1458 }
 0x184   : > { %v2532_v26 = vadd.f32 %v787_v25, %v709_v63 }
 0x185   : > { %v816_v27 = vpop.f32.mrf.mxu1  ;;  %v856_v28 = vadd.f32 %v842_v13, %v708_v24 }
 0x186   : > { %v858_v30 = vadd.f32 %v816_v27, %v710_v0 }
 0x187   : > { %v1074_v31 = vpop.f32.mrf.mxu2 }
 0x18a   : > { %v697_v32 = vpop.f32.mrf.mxu3 }
 0x18b   : > { %v711_v29 = vadd.f32 %v697_v32, %v563_v60  ;;  %v955_v33 = vpop.f32.mrf.mxu0 }
 0x18c   : > { %v997_v34 = vadd.f32 %v955_v33, %v849_v6 }
 0x18d   : > { %v984_v41 = vpop.f32.mrf.mxu1  ;;  %v859_v42 = vadd.f32 %v845_v23, %v711_v29  ;;  %v2573_v29 = vpop.permute.xlu0 %1463 }
 0x18e   : > { %v998_v43 = vadd.f32 %v984_v41, %v850_v40 }
 0x18f   : > { %v1077_v44 = vpop.f32.mrf.mxu2 }
 0x192   : > { %v926_v45 = vpop.f32.mrf.mxu3 }
 0x193   : > { %v958_v46 = vpop.f32.mrf.mxu0  ;;  %v996_v12 = vadd.f32 %v926_v45, %v2526_v4 }
 0x194   : > { %v2534_v47 = vadd.f32 %v958_v46, %v852_v14 }
 0x195   : > { %v987_v48 = vpop.f32.mrf.mxu1  ;;  %v1144_v14 = vadd.f32 %v1074_v31, %v996_v12 }
 0x196   : > { %v1001_v49 = vadd.f32 %v987_v48, %v853_v21 }
 0x197   : > { %v2536_v37 = vpop.f32.mrf.mxu2 }
 0x19a   : > { %v929_v39 = vpop.f32.mrf.mxu3 }
 0x19b   : > { %v961_v50 = vpop.f32.mrf.mxu0 }
 0x19c   : > { %v2538_v51 = vadd.f32 %v961_v50, %v855_v22  ;;  %v999_v22 = vadd.f32 %v929_v39, %v2528_v11 }
 0x19d   : > { %v990_v52 = vpop.f32.mrf.mxu1 }
 0x19e   : > { %v1004_v53 = vadd.f32 %v990_v52, %v856_v28  ;;  %v1147_v4 = vadd.f32 %v1077_v44, %v999_v22  ;;  %v2585_v52 = vpop.permute.xlu1 %1468 }
 0x19f   : > { %v2540_v54 = vpop.f32.mrf.mxu2 }
 0x1a2   : > { %v932_v55 = vpop.f32.mrf.mxu3 }
 0x1a3   : > { %v964_v56 = vpop.f32.mrf.mxu0  ;;  %v1002_v33 = vadd.f32 %v932_v55, %v2530_v18 }
 0x1a4   : > { %v1006_v57 = vadd.f32 %v964_v56, %v858_v30 }
 0x1a5   : > { %v993_v36 = vpop.f32.mrf.mxu1  ;;  %v1150_v48 = vadd.f32 %v2536_v37, %v1002_v33 }
 0x1a6   : > { %v1007_v38 = vadd.f32 %v993_v36, %v859_v42 }
 0x1a7   : > { %v1251_v60 = vpop.f32.mrf.mxu2 }
 0x1aa   : > { %v2542_v58 = vpop.f32.mrf.mxu3 }
 0x1ab   : > { %v1132_v59 = vpop.f32.mrf.mxu0 }
 0x1ac   : > { %v1146_v61 = vadd.f32 %v1132_v59, %v998_v43 }
 0x1ad   : > { %v1222_v62 = vpop.f32.mrf.mxu1 }
 0x1ae   : > { %v1292_v13 = vadd.f32 %v1222_v62, %v1144_v14 }
 0x1af   : > { %v2546_v3 = vpop.f32.mrf.mxu2 }
 0x1b2   : > { %v1103_v63 = vpop.f32.mrf.mxu3 }
 0x1b3   : > { %v1135_v2 = vpop.f32.mrf.mxu0  ;;  %v1145_v28 = vadd.f32 %v1103_v63, %v997_v34 }
 0x1b4   : > { %v2544_v35 = vadd.f32 %v1135_v2, %v1001_v49 }
 0x1b5   : > { %v1225_v1 = vpop.f32.mrf.mxu1  ;;  %v1293_v44 = vadd.f32 %v1251_v60, %v1145_v28  ;;  %v2596_v60 = vpop.permute.xlu2 %1473 }
 0x1b6   : > { %v1295_v30 = vadd.f32 %v1225_v1, %v1147_v4 }
 0x1b7   : > { %v2552_v8 = vpop.f32.mrf.mxu2 }
 0x1ba   : > { %v2548_v5 = vpop.f32.mrf.mxu3 }
 0x1bb   : > { %v1138_v0 = vpop.f32.mrf.mxu0  ;;  %v1148_v62 = vadd.f32 %v2548_v5, %v2534_v47 }
 0x1bc   : > { %v2550_v6 = vadd.f32 %v1138_v0, %v1004_v53  ;;  %v1005_v53 = vadd.f32 %v2542_v58, %v2532_v26 }
 0x1bd   : > { %v1228_v9 = vpop.f32.mrf.mxu1  ;;  %v1296_v2 = vadd.f32 %v2546_v3, %v1148_v62 }
 0x1be   : > { %v1298_v50 = vadd.f32 %v1228_v9, %v1150_v48 }
 0x1bf   : > { %v1260_v15 = vpop.f32.mrf.mxu2 }
 0x1c2   : > { %v2554_v7 = vpop.f32.mrf.mxu3 }
 0x1c3   : > { %v1141_v10 = vpop.f32.mrf.mxu0  ;;  %v1151_v3 = vadd.f32 %v2554_v7, %v2538_v51 }
 0x1c4   : > { %v2557_v40 = vadd.f32 %v1141_v10, %v1007_v38 }
 0x1c5   : > { %v1231_v17 = vpop.f32.mrf.mxu1  ;;  %v1299_v10 = vadd.f32 %v2552_v8, %v1151_v3 }
 0x1c7   : > { %v1428_v41 = vpop.f32.mrf.mxu2 }
 0x1ca   : > { %v1112_v16 = vpop.f32.mrf.mxu3 }
 0x1cb   : > { %v1154_v19 = vadd.f32 %v1112_v16, %v1006_v57  ;;  %v1370_v21 = vpop.f32.mrf.mxu0  ;;  %v1153_v57 = vadd.f32 %v2540_v54, %v1005_v53 }
 0x1cc   : > { %v1440_v23 = vadd.f32 %v1370_v21, %v1292_v13 }
 0x1cd   : > { %v2561_v24 = vadd.f32 %v1260_v15, %v1154_v19  ;;  %v1399_v42 = vpop.f32.mrf.mxu1  ;;  %v1301_v59 = vadd.f32 %v1231_v17, %v1153_v57 }
 0x1ce   : > { %v1476_v25 = vadd.f32 %v1459_v20, %v1440_v23  ;;  %v1441_v49 = vadd.f32 %v1399_v42, %v1293_v44 }
 0x1cf   : > { %v1431_v17 = vpop.f32.mrf.mxu2 }
 0x1d0   : > { %v1488_v27 = vmax.f32 %v1476_v25, 0.0  ;;  %v1477_v37 = vadd.f32 %v1459_v20, %v1441_v49 }
 0x1d2   : > { %v1280_v31 = vpop.f32.mrf.mxu3  ;;  %1543 = vrot.lane.b32.xlu0 %v1488_v27, %s2052_s13  ;;  %1526 = vrot.lane.b32.xlu2 %v1488_v27, %s2036_s16  ;;  %1501 = vst.msk [vmem:[%s2566_s5] sm:$0xff] %vm1500_vm10, %v1488_v27  ;;  %v1489_v36 = vmax.f32 %v1477_v37, 0.0 }
 0x1d3   : > { %v1294_v11 = vadd.f32 %v1280_v31, %v1146_v61  ;;  %1509 = vrot.lane.b32.xlu1 %v1488_v27, %s2038_s28  ;;  %v1373_v32 = vpop.f32.mrf.mxu0 }
 0x1d4   : > { %v1443_v34 = vadd.f32 %v1373_v32, %v1295_v30 }
 0x1d5   : > { %v1442_v43 = vadd.f32 %v1428_v41, %v1294_v11  ;;  %v1402_v63 = vpop.f32.mrf.mxu1 }
 0x1d6   : > { %v1479_v45 = vadd.f32 %v2573_v29, %v1443_v34  ;;  %v1444_v1 = vadd.f32 %v1402_v63, %v1296_v2 }
 0x1d7   : > { %v2577_v46 = vadd.f32 %v1459_v20, %v1442_v43  ;;  %v1434_v44 = vpop.f32.mrf.mxu2 }
 0x1d8   : > { %v1491_v39 = vmax.f32 %v1479_v45, 0.0  ;;  %v1480_v0 = vadd.f32 %v2573_v29, %v1444_v1 }
 0x1d9   : > { %v1490_v47 = vmax.f32 %v2577_v46, 0.0 }
 0x1da   : > { %1594 = vrot.lane.b32.xlu0 %v1488_v27, %s2041_s4  ;;  %1577 = vrot.lane.b32.xlu2 %v1488_v27, %s2053_s8  ;;  %1502 = vst.msk [vmem:[%s2566_s5 + $0x10] sm:$0xff] %vm1500_vm10, %v1491_v39  ;;  %v1492_v9 = vmax.f32 %v1480_v0, 0.0  ;;  %v1283_v15 = vpop.f32.mrf.mxu3 }
 0x1db   : > { %1560 = vrot.lane.b32.xlu1 %v1488_v27, %s2039_s29  ;;  %v1376_v18 = vpop.f32.mrf.mxu0  ;;  %v1297_v8 = vadd.f32 %v1283_v15, %v2544_v35 }
 0x1dc   : > { %v1446_v55 = vadd.f32 %v1376_v18, %v1298_v50 }
 0x1dd   : > { %v1405_v5 = vpop.f32.mrf.mxu1  ;;  %v1445_v19 = vadd.f32 %v1431_v17, %v1297_v8 }
 0x1de   : > { %v1482_v56 = vadd.f32 %v2585_v52, %v1446_v55  ;;  %v1447_v12 = vadd.f32 %v1405_v5, %v1299_v10 }
 0x1df   : > { %v2651_v23 = vadd.f32 %v2573_v29, %v1445_v19  ;;  %v1437_v55 = vpop.f32.mrf.mxu2 }
 0x1e0   : > { %v1494_v38 = vmax.f32 %v1482_v56, 0.0  ;;  %v1483_v14 = vadd.f32 %v2585_v52, %v1447_v12 }
 0x1e1   : > { %v1493_v35 = vmax.f32 %v2651_v23, 0.0 }
 0x1e2   : > { %1645 = vrot.lane.b32.xlu0 %v1489_v36, %s2043_s6  ;;  %1617 = vrot.lane.b32.xlu2 %v1489_v36, %s2054_s10  ;;  %1503 = vst.msk [vmem:[%s2566_s5 + $0x20] sm:$0xff] %vm1500_vm10, %v1494_v38  ;;  %v1495_v7 = vmax.f32 %v1483_v14, 0.0 }
 0x1e3   : > { %1615 = vrot.lane.b32.xlu1 %v1488_v27, %s2054_s10  ;;  %v1379_v26 = vpop.f32.mrf.mxu0 }
 0x1e4   : > { %v1449_v58 = vadd.f32 %v1379_v26, %v1301_v59 }
 0x1e5   : > { %v1408_v31 = vpop.f32.mrf.mxu1 }
 0x1e6   : > { %v1485_v61 = vadd.f32 %v2596_v60, %v1449_v58  ;;  %v1450_v29 = vadd.f32 %v1408_v31, %v2561_v24  ;;  %v1286_v24 = vpop.f32.mrf.mxu3 }
 0x1e8   : > { %v2599_v54 = vmax.f32 %v1485_v61, 0.0  ;;  %v1486_v33 = vadd.f32 %v2596_v60, %v1450_v29 }
 0x1ea   : > { %1693 = vrot.lane.b32.xlu0 %v1489_v36, %s2055_s14  ;;  %1677 = vrot.lane.b32.xlu2 %v1489_v36, %s2044_s7  ;;  %1504 = vst.msk [vmem:[%s2566_s5 + $0x30] sm:$0xff] %vm1500_vm10, %v2599_v54  ;;  %v1498_v43 = vmax.f32 %v1486_v33, 0.0 }
 0x1eb   : > { %1661 = vrot.lane.b32.xlu1 %v1489_v36, %s2040_s30 }
 0x1ee   : > { %v1289_v49 = vpop.f32.mrf.mxu3 }
 0x1ef   : > { %v1303_v53 = vadd.f32 %v1289_v49, %v2557_v40 }
 0x1f1   : > { %v1451_v57 = vadd.f32 %v1437_v55, %v1303_v53 }
 0x1f2   : > { %1745 = vrot.lane.b32.xlu0 %v1489_v36, %s2048_s11  ;;  %1725 = vrot.lane.b32.xlu2 %v1489_v36, %s2056_s15 }
 0x1f3   : > { %1709 = vrot.lane.b32.xlu1 %v1489_v36, %s2046_s9 }
 0x1fa   : > { %1528 = vrot.lane.b32.xlu0 %v1491_v39, %s2036_s16  ;;  %1511 = vrot.lane.b32.xlu2 %v1491_v39, %s2038_s28 }
 0x1fb   : > { %1545 = vrot.lane.b32.xlu1 %v1491_v39, %s2052_s13 }
 0x202   : > { %1579 = vrot.lane.b32.xlu0 %v1491_v39, %s2053_s8  ;;  %1562 = vrot.lane.b32.xlu2 %v1491_v39, %s2039_s29 }
 0x203   : > { %1596 = vrot.lane.b32.xlu1 %v1491_v39, %s2041_s4 }
 0x20a   : > { %1619 = vrot.lane.b32.xlu0 %v1491_v39, %s2054_s10  ;;  %1663 = vrot.lane.b32.xlu2 %v1492_v9, %s2040_s30  ;;  %v1300_v39 = vadd.f32 %v1286_v24, %v2550_v6 }
 0x20b   : > { %1621 = vrot.lane.b32.xlu1 %v1492_v9, %s2054_s10 }
 0x20c   : > { %v1448_v56 = vadd.f32 %v1434_v44, %v1300_v39 }
 0x20e   : > { %v1484_v6 = vadd.f32 %v2585_v52, %v1448_v56 }
 0x210   : > { %v1496_v26 = vmax.f32 %v1484_v6, 0.0 }
 0x212   : > { %1679 = vrot.lane.b32.xlu0 %v1492_v9, %s2044_s7  ;;  %1711 = vrot.lane.b32.xlu2 %v1492_v9, %s2046_s9 }
 0x213   : > { %1647 = vrot.lane.b32.xlu1 %v1492_v9, %s2043_s6 }
 0x21a   : > { %1727 = vrot.lane.b32.xlu0 %v1492_v9, %s2056_s15  ;;  %1749 = vrot.lane.b32.xlu2 %v1492_v9, %s2048_s11 }
 0x21b   : > { %1695 = vrot.lane.b32.xlu1 %v1492_v9, %s2055_s14 }
 0x222   : > { %1513 = vrot.lane.b32.xlu0 %v1494_v38, %s2038_s28  ;;  %1774 = vrot.lane.b32.xlu2 %v1490_v47, %s2057_s17 }
 0x223   : > { %1747 = vrot.lane.b32.xlu1 %v1490_v47, %s2048_s11 }
 0x22a   : > { %1564 = vrot.lane.b32.xlu0 %v1494_v38, %s2039_s29  ;;  %1547 = vrot.lane.b32.xlu2 %v1494_v38, %s2052_s13 }
 0x22b   : > { %1530 = vrot.lane.b32.xlu1 %v1494_v38, %s2036_s16 }
 0x22c   : > { %v1527_v51 = vpop.permute.xlu2 %1526 }
 0x232   : > { %1625 = vrot.lane.b32.xlu0 %v1495_v7, %s2054_s10  ;;  %1598 = vrot.lane.b32.xlu2 %v1494_v38, %s2041_s4 }
 0x233   : > { %1581 = vrot.lane.b32.xlu1 %v1494_v38, %s2053_s8 }
 0x234   : > { %v1578_v13 = vpop.permute.xlu2 %1577 }
 0x23a   : > { %1665 = vrot.lane.b32.xlu0 %v1495_v7, %s2040_s30  ;;  %1623 = vrot.lane.b32.xlu2 %v1494_v38, %s2054_s10  ;;  %v1487_v38 = vadd.f32 %v2596_v60, %v1451_v57 }
 0x23b   : > { %1681 = vrot.lane.b32.xlu1 %v1495_v7, %s2044_s7 }
 0x23c   : > { %v1618_v16 = vpop.permute.xlu2 %1617  ;;  %v1499_v58 = vmax.f32 %v1487_v38, 0.0 }
 0x242   : > { %1713 = vrot.lane.b32.xlu0 %v1495_v7, %s2046_s9  ;;  %1649 = vrot.lane.b32.xlu2 %v1495_v7, %s2043_s6 }
 0x243   : > { %1729 = vrot.lane.b32.xlu1 %v1495_v7, %s2056_s15 }
 0x244   : > { %v1544_v21 = vpop.permute.xlu0 %1543  ;;  %v1678_v22 = vpop.permute.xlu2 %1677 }
 0x245   : > { %v1510_v20 = vpop.permute.xlu1 %1509 }
 0x246   : > { %1522 = vst.msk [vmem:[%s2566_s5] sm:$0xff] %vm1521_vm11, %v1510_v20 }
 0x247   : > { %1539 = vst.msk [vmem:[%s2566_s5] sm:$0xff] %vm1538_vm12, %v1527_v51 }
 0x248   : > { %1556 = vst.msk [vmem:[%s2566_s5] sm:$0xff] %vm1555_vm13, %v1544_v21 }
 0x24a   : > { %1751 = vrot.lane.b32.xlu0 %v1493_v35, %s2048_s11  ;;  %1697 = vrot.lane.b32.xlu2 %v1495_v7, %s2055_s14 }
 0x24b   : > { %1753 = vrot.lane.b32.xlu1 %v1495_v7, %s2048_s11 }
 0x24c   : > { %v1595_v25 = vpop.permute.xlu0 %1594  ;;  %v1726_v4 = vpop.permute.xlu2 %1725 }
 0x24d   : > { %v1561_v27 = vpop.permute.xlu1 %1560 }
 0x24e   : > { %1573 = vst.msk [vmem:[%s2566_s5] sm:$0xff] %vm1572_vm14, %v1561_v27 }
 0x24f   : > { %1590 = vst.msk [vmem:[%s2566_s5] sm:$0xff] %vm1589_vm15, %v1578_v13 }
 0x250   : > { %1607 = vst.msk [vmem:[%s2566_s5] sm:$0xff] %vm1606_vm0, %v1595_v25 }
 0x252   : > { %1549 = vrot.lane.b32.xlu0 %v2599_v54, %s2052_s13  ;;  %1532 = vrot.lane.b32.xlu2 %v2599_v54, %s2036_s16 }
 0x253   : > { %1515 = vrot.lane.b32.xlu1 %v2599_v54, %s2038_s28 }
 0x254   : > { %v1646_v28 = vpop.permute.xlu0 %1645  ;;  %v1512_v30 = vpop.permute.xlu2 %1511 }
 0x255   : > { %1657 = vst.msk [vmem:[%s2566_s5 + $0x8] sm:$0xff] %vm1500_vm10, %v1646_v28  ;;  %v1616_v11 = vpop.permute.xlu1 %1615 }
 0x256   : > { %1523 = vst.msk [vmem:[%s2566_s5 + $0x10] sm:$0xff] %vm1521_vm11, %v1512_v30  ;;  %v1632_v32 = vsel %vm1631_vm1, %v1616_v11, %v1618_v16 }
 0x257   : > { %1641 = vst.msk [vmem:[%s2566_s5] sm:$0xff] %vm1640_vm2, %v1632_v32 }
 0x25a   : > { %1600 = vrot.lane.b32.xlu0 %v2599_v54, %s2041_s4  ;;  %1583 = vrot.lane.b32.xlu2 %v2599_v54, %s2053_s8 }
 0x25b   : > { %1566 = vrot.lane.b32.xlu1 %v2599_v54, %s2039_s29 }
 0x25c   : > { %v1694_v41 = vpop.permute.xlu0 %1693  ;;  %v1563_v34 = vpop.permute.xlu2 %1562 }
 0x25d   : > { %v1662_v42 = vpop.permute.xlu1 %1661 }
 0x25e   : > { %1673 = vst.msk [vmem:[%s2566_s5 + $0x8] sm:$0xff] %vm1521_vm11, %v1662_v42 }
 0x25f   : > { %1689 = vst.msk [vmem:[%s2566_s5 + $0x8] sm:$0xff] %vm1538_vm12, %v1678_v22 }
 0x260   : > { %1705 = vst.msk [vmem:[%s2566_s5 + $0x8] sm:$0xff] %vm1555_vm13, %v1694_v41 }
 0x262   : > { %1651 = vrot.lane.b32.xlu0 %v1498_v43, %s2043_s6  ;;  %1629 = vrot.lane.b32.xlu2 %v1498_v43, %s2054_s10 }
 0x263   : > { %1627 = vrot.lane.b32.xlu1 %v2599_v54, %s2054_s10 }
 0x264   : > { %v1746_v45 = vpop.permute.xlu0 %1745  ;;  %v1664_v46 = vpop.permute.xlu2 %1663 }
 0x265   : > { %v1710_v48 = vpop.permute.xlu1 %1709 }
 0x266   : > { %1721 = vst.msk [vmem:[%s2566_s5 + $0x8] sm:$0xff] %vm1572_vm14, %v1710_v48 }
 0x267   : > { %1737 = vst.msk [vmem:[%s2566_s5 + $0x8] sm:$0xff] %vm1589_vm15, %v1726_v4 }
 0x26a   : > { %1699 = vrot.lane.b32.xlu0 %v1498_v43, %s2055_s14  ;;  %1683 = vrot.lane.b32.xlu2 %v1498_v43, %s2044_s7 }
 0x26b   : > { %1667 = vrot.lane.b32.xlu1 %v1498_v43, %s2040_s30 }
 0x26c   : > { %v1529_v50 = vpop.permute.xlu0 %1528  ;;  %v1712_v18 = vpop.permute.xlu2 %1711 }
 0x26d   : > { %1540 = vst.msk [vmem:[%s2566_s5 + $0x10] sm:$0xff] %vm1538_vm12, %v1529_v50  ;;  %v1546_v37 = vpop.permute.xlu1 %1545 }
 0x26e   : > { %1557 = vst.msk [vmem:[%s2566_s5 + $0x10] sm:$0xff] %vm1555_vm13, %v1546_v37 }
 0x26f   : > { %1574 = vst.msk [vmem:[%s2566_s5 + $0x10] sm:$0xff] %vm1572_vm14, %v1563_v34 }
 0x272   : > { %1757 = vrot.lane.b32.xlu0 %v1498_v43, %s2048_s11  ;;  %1731 = vrot.lane.b32.xlu2 %v1498_v43, %s2056_s15 }
 0x273   : > { %1715 = vrot.lane.b32.xlu1 %v1498_v43, %s2046_s9 }
 0x274   : > { %v1580_v40 = vpop.permute.xlu0 %1579  ;;  %v2721_v36 = vpop.permute.xlu2 %1749 }
 0x275   : > { %1591 = vst.msk [vmem:[%s2566_s5 + $0x10] sm:$0xff] %vm1589_vm15, %v1580_v40  ;;  %v1597_v59 = vpop.permute.xlu1 %1596 }
 0x276   : > { %1608 = vst.msk [vmem:[%s2566_s5 + $0x10] sm:$0xff] %vm1606_vm0, %v1597_v59 }
 0x27a   : > { %1776 = vrot.lane.b32.xlu0 %v1493_v35, %s2057_s17  ;;  %1755 = vrot.lane.b32.xlu2 %v1496_v26, %s2048_s11 }
 0x27b   : > { %1759 = vrot.lane.b32.xlu1 %v1499_v58, %s2048_s11 }
 0x27c   : > { %v1620_v52 = vpop.permute.xlu0 %1619  ;;  %v1775_v60 = vpop.permute.xlu2 %1774 }
 0x27d   : > { %v1622_v61 = vpop.permute.xlu1 %1621 }
 0x27e   : > { %v1633_v54 = vsel %vm1631_vm1, %v1620_v52, %v1622_v61 }
 0x27f   : > { %1642 = vst.msk [vmem:[%s2566_s5 + $0x10] sm:$0xff] %vm1640_vm2, %v1633_v54 }
 0x282   : > { %1780 = vrot.lane.b32.xlu2 %v1499_v58, %s2057_s17 }
 0x283   : > { %1778 = vrot.lane.b32.xlu1 %v1496_v26, %s2057_s17 }
 0x284   : > { %v1680_v62 = vpop.permute.xlu0 %1679  ;;  %v1548_v63 = vpop.permute.xlu2 %1547 }
 0x285   : > { %v1648_v2 = vpop.permute.xlu1 %1647 }
 0x286   : > { %1658 = vst.msk [vmem:[%s2566_s5 + $0x18] sm:$0xff] %vm1500_vm10, %v1648_v2 }
 0x287   : > { %1674 = vst.msk [vmem:[%s2566_s5 + $0x18] sm:$0xff] %vm1521_vm11, %v1664_v46 }
 0x288   : > { %1690 = vst.msk [vmem:[%s2566_s5 + $0x18] sm:$0xff] %vm1538_vm12, %v1680_v62 }
 0x28c   : > { %v1728_v1 = vpop.permute.xlu0 %1727  ;;  %v1599_v0 = vpop.permute.xlu2 %1598 }
 0x28d   : > { %v1696_v9 = vpop.permute.xlu1 %1695 }
 0x28e   : > { %1706 = vst.msk [vmem:[%s2566_s5 + $0x18] sm:$0xff] %vm1555_vm13, %v1696_v9 }
 0x28f   : > { %1722 = vst.msk [vmem:[%s2566_s5 + $0x18] sm:$0xff] %vm1572_vm14, %v1712_v18 }
 0x290   : > { %1738 = vst.msk [vmem:[%s2566_s5 + $0x18] sm:$0xff] %vm1589_vm15, %v1728_v1 }
 0x294   : > { %v1514_v47 = vpop.permute.xlu0 %1513  ;;  %v1624_v3 = vpop.permute.xlu2 %1623 }
 0x295   : > { %1524 = vst.msk [vmem:[%s2566_s5 + $0x20] sm:$0xff] %vm1521_vm11, %v1514_v47  ;;  %v1748_v5 = vpop.permute.xlu1 %1747 }
 0x296   : > { %v1762_v10 = vsel %vm1761_vm3, %v1746_v45, %v1748_v5 }
 0x297   : > { %1770 = vst.msk [vmem:[%s2566_s5 + $0x8] sm:$0xff] %vm1606_vm0, %v1762_v10 }
 0x298   : > { %1786 = vst.msk [vmem:[%s2566_s5 + $0x8] sm:$0xff] %vm1640_vm2, %v1775_v60 }
 0x29c   : > { %v1565_v12 = vpop.permute.xlu0 %1564  ;;  %v1650_v14 = vpop.permute.xlu2 %1649 }
 0x29d   : > { %1659 = vst.msk [vmem:[%s2566_s5 + $0x28] sm:$0xff] %vm1500_vm10, %v1650_v14  ;;  %v1531_v51 = vpop.permute.xlu1 %1530 }
 0x29e   : > { %1541 = vst.msk [vmem:[%s2566_s5 + $0x20] sm:$0xff] %vm1538_vm12, %v1531_v51 }
 0x29f   : > { %1558 = vst.msk [vmem:[%s2566_s5 + $0x20] sm:$0xff] %vm1555_vm13, %v1548_v63 }
 0x2a0   : > { %1575 = vst.msk [vmem:[%s2566_s5 + $0x20] sm:$0xff] %vm1572_vm14, %v1565_v12 }
 0x2a4   : > { %v1626_v7 = vpop.permute.xlu0 %1625  ;;  %v1698_v13 = vpop.permute.xlu2 %1697 }
 0x2a5   : > { %v1634_v15 = vsel %vm1631_vm1, %v1624_v3, %v1626_v7  ;;  %v1582_v8 = vpop.permute.xlu1 %1581 }
 0x2a6   : > { %1592 = vst.msk [vmem:[%s2566_s5 + $0x20] sm:$0xff] %vm1589_vm15, %v1582_v8 }
 0x2a7   : > { %1609 = vst.msk [vmem:[%s2566_s5 + $0x20] sm:$0xff] %vm1606_vm0, %v1599_v0 }
 0x2a8   : > { %1643 = vst.msk [vmem:[%s2566_s5 + $0x20] sm:$0xff] %vm1640_vm2, %v1634_v15 }
 0x2ac   : > { %v1666_v16 = vpop.permute.xlu0 %1665  ;;  %v1533_v17 = vpop.permute.xlu2 %1532 }
 0x2ad   : > { %1675 = vst.msk [vmem:[%s2566_s5 + $0x28] sm:$0xff] %vm1521_vm11, %v1666_v16  ;;  %v1682_v19 = vpop.permute.xlu1 %1681 }
 0x2ae   : > { %1691 = vst.msk [vmem:[%s2566_s5 + $0x28] sm:$0xff] %vm1538_vm12, %v1682_v19 }
 0x2af   : > { %1707 = vst.msk [vmem:[%s2566_s5 + $0x28] sm:$0xff] %vm1555_vm13, %v1698_v13 }
 0x2b4   : > { %v1714_v21 = vpop.permute.xlu0 %1713  ;;  %v1584_v22 = vpop.permute.xlu2 %1583 }
 0x2b5   : > { %1723 = vst.msk [vmem:[%s2566_s5 + $0x28] sm:$0xff] %vm1572_vm14, %v1714_v21  ;;  %v1730_v23 = vpop.permute.xlu1 %1729 }
 0x2b6   : > { %1739 = vst.msk [vmem:[%s2566_s5 + $0x28] sm:$0xff] %vm1589_vm15, %v1730_v23 }
 0x2bc   : > { %v1752_v20 = vpop.permute.xlu0 %1751  ;;  %v1630_v35 = vpop.permute.xlu2 %1629 }
 0x2bd   : > { %v1763_v25 = vsel %vm1761_vm3, %v2721_v36, %v1752_v20  ;;  %v1754_v4 = vpop.permute.xlu1 %1753 }
 0x2be   : > { %1771 = vst.msk [vmem:[%s2566_s5 + $0x18] sm:$0xff] %vm1606_vm0, %v1763_v25 }
 0x2c4   : > { %v1550_v27 = vpop.permute.xlu0 %1549  ;;  %v1684_v28 = vpop.permute.xlu2 %1683 }
 0x2c5   : > { %v1516_v30 = vpop.permute.xlu1 %1515 }
 0x2c6   : > { %1525 = vst.msk [vmem:[%s2566_s5 + $0x30] sm:$0xff] %vm1521_vm11, %v1516_v30 }
 0x2c7   : > { %1542 = vst.msk [vmem:[%s2566_s5 + $0x30] sm:$0xff] %vm1538_vm12, %v1533_v17 }
 0x2c8   : > { %1559 = vst.msk [vmem:[%s2566_s5 + $0x30] sm:$0xff] %vm1555_vm13, %v1550_v27 }
 0x2cc   : > { %v1601_v31 = vpop.permute.xlu0 %1600  ;;  %v1732_v11 = vpop.permute.xlu2 %1731 }
 0x2cd   : > { %v1567_v32 = vpop.permute.xlu1 %1566 }
 0x2ce   : > { %1576 = vst.msk [vmem:[%s2566_s5 + $0x30] sm:$0xff] %vm1572_vm14, %v1567_v32 }
 0x2cf   : > { %1593 = vst.msk [vmem:[%s2566_s5 + $0x30] sm:$0xff] %vm1589_vm15, %v1584_v22 }
 0x2d0   : > { %1610 = vst.msk [vmem:[%s2566_s5 + $0x30] sm:$0xff] %vm1606_vm0, %v1601_v31 }
 0x2d4   : > { %v1652_v29 = vpop.permute.xlu0 %1651  ;;  %v1756_v33 = vpop.permute.xlu2 %1755 }
 0x2d5   : > { %1660 = vst.msk [vmem:[%s2566_s5 + $0x38] sm:$0xff] %vm1500_vm10, %v1652_v29  ;;  %v1764_v41 = vsel %vm1761_vm3, %v1754_v4, %v1756_v33  ;;  %v1628_v34 = vpop.permute.xlu1 %1627 }
 0x2d6   : > { %1772 = vst.msk [vmem:[%s2566_s5 + $0x28] sm:$0xff] %vm1606_vm0, %v1764_v41  ;;  %v1635_v42 = vsel %vm1631_vm1, %v1628_v34, %v1630_v35 }
 0x2d7   : > { %1644 = vst.msk [vmem:[%s2566_s5 + $0x30] sm:$0xff] %vm1640_vm2, %v1635_v42 }
 0x2dc   : > { %v1700_v24 = vpop.permute.xlu0 %1699  ;;  %v1781_v39 = vpop.permute.xlu2 %1780 }
 0x2dd   : > { %v1668_v43 = vpop.permute.xlu1 %1667 }
 0x2de   : > { %1676 = vst.msk [vmem:[%s2566_s5 + $0x38] sm:$0xff] %vm1521_vm11, %v1668_v43 }
 0x2df   : > { %1692 = vst.msk [vmem:[%s2566_s5 + $0x38] sm:$0xff] %vm1538_vm12, %v1684_v28 }
 0x2e0   : > { %1708 = vst.msk [vmem:[%s2566_s5 + $0x38] sm:$0xff] %vm1555_vm13, %v1700_v24 }
 0x2e4   : > { %v1758_v44 = vpop.permute.xlu0 %1757 }
 0x2e5   : > { %v1716_v45 = vpop.permute.xlu1 %1715 }
 0x2e6   : > { %1724 = vst.msk [vmem:[%s2566_s5 + $0x38] sm:$0xff] %vm1572_vm14, %v1716_v45 }
 0x2e7   : > { %1740 = vst.msk [vmem:[%s2566_s5 + $0x38] sm:$0xff] %vm1589_vm15, %v1732_v11 }
 0x2ec   : > { %v1777_v46 = vpop.permute.xlu0 %1776 }
 0x2ed   : > { %1787 = vst.msk [vmem:[%s2566_s5 + $0x18] sm:$0xff] %vm1640_vm2, %v1777_v46  ;;  %v1760_v48 = vpop.permute.xlu1 %1759 }
 0x2ee   : > { %v1765_v49 = vsel %vm1761_vm3, %v1758_v44, %v1760_v48 }
 0x2ef   : > { %1773 = vst.msk [vmem:[%s2566_s5 + $0x38] sm:$0xff] %vm1606_vm0, %v1765_v49 }
 0x2f0   : > { %1789 = vst.msk [vmem:[%s2566_s5 + $0x38] sm:$0xff] %vm1640_vm2, %v1781_v39 }
 0x2f5   : > { %v1779_v50 = vpop.permute.xlu1 %1778 }
 0x2f6   : > { %1788 = vst.msk [vmem:[%s2566_s5 + $0x28] sm:$0xff] %vm1640_vm2, %v1779_v50 }
 0x2f7 PF: > { %s13_s12 = sadd.s32 1, %s2034_s12  }
 0x2f8   : > { %p10_p4 = scmp.ge.s32.totalorder %s13_s12, 4  }
 0x2fa   :  { %12 = sbr.rel (!%p10_p4) target bundleno = 1 (0x1), region = 71 }

</bundles_post_ra>
